<compile_context>
chip_gen: v7x
topology: tpu7x:2x2x1
jax: 0.10.0
libtpu: 0.0.40
codegen_flags: <defaults>
</compile_context>

<pallas_src>
import functools

import jax
import jax.numpy as jnp
from jax import lax
from jax.experimental import pallas as pl
from jax.experimental.pallas import tpu as pltpu

N_LABELS = 21
L_PAD = 128          # lane/sublane-padded logit width (labels along sublanes in-kernel)


def _round_up(x, m):
    return ((x + m - 1) // m) * m


def _gelu(x):
    # tanh approximation of GELU (works in f32 or bf16).
    # TODO(synk): PyTorch nn.GELU default is the exact erf form; swap in an erf-based
    # implementation if bit-level parity with the original module is required.
    c0 = jnp.asarray(0.7978845608028654, x.dtype)   # sqrt(2/pi)
    c1 = jnp.asarray(0.044715, x.dtype)
    half = jnp.asarray(0.5, x.dtype)
    one = jnp.asarray(1.0, x.dtype)
    return half * x * (one + jnp.tanh(c0 * (x + c1 * x * x * x)))


def _act(h_f32, bf16_elementwise):
    """GELU + cast for the next bf16 MXU matmul."""
    if bf16_elementwise:
        return _gelu(h_f32.astype(jnp.bfloat16))    # bf16 VPU/EUP path (v6e / v7x)
    return _gelu(h_f32).astype(jnp.bfloat16)        # f32 VPU path (v5e and older)


# --------------------------------------------------------------------------------------
# Kernel
# --------------------------------------------------------------------------------------
def seq_recovery_kernel(x_ref, lbl_ref, msk_ref,
                        w1_ref, b1_ref, w2_ref, b2_ref, w3_ref, b3_ref,
                        ce_ref, *, bf16_elementwise):
    """Transposed-orientation FeedForward + masked cross entropy.

    Residues live on the lane axis, labels on the sublane axis, so labels / mask / CE
    are lane-dense (1, TM) rows and no cross-layout transpose is needed anywhere.
    """
    x = x_ref[...]                                                       # (TM, d) bf16

    # layer 1: h1T[o, t] = sum_i w1t[o, i] * x[t, i]   (q @ k^T-style contraction)
    h = lax.dot_general(w1_ref[...], x, (((1,), (1,)), ((), ())),
                        preferred_element_type=jnp.float32) + b1_ref[...]  # (d, TM) f32
    h = _act(h, bf16_elementwise)
    # layer 2: h2T = w2T @ h1T
    h = jnp.dot(w2_ref[...], h, preferred_element_type=jnp.float32) + b2_ref[...]
    h = _act(h, bf16_elementwise)
    # output layer: logitsT = w3T @ h2T + b3T ; padded label rows (21..127) carry a
    # -1e30 sentinel baked into b3T, so no in-kernel lane-mask select is needed.
    logits = jnp.dot(w3_ref[...], h,
                     preferred_element_type=jnp.float32) + b3_ref[...]   # (L_PAD, TM) f32

    # Cross entropy, reduced along the sublane (label) axis -> lane-dense (1, TM).
    m = jnp.max(logits, axis=0, keepdims=True)                           # (1, TM)
    lse = m + jnp.log(jnp.sum(jnp.exp(logits - m), axis=0, keepdims=True))
    row = lax.broadcasted_iota(jnp.int32, logits.shape, 0)               # (L_PAD, TM)
    onehot = (row == lbl_ref[...]).astype(jnp.float32)                   # (L_PAD, TM)
    picked = jnp.sum(onehot * logits, axis=0, keepdims=True)             # (1, TM)

    # masked_fill(~mask, 0); wrapper-padded residues also carry mask == 0.
    ce_ref[...] = (lse - picked) * msk_ref[...]


# --------------------------------------------------------------------------------------
# Parameters
# --------------------------------------------------------------------------------------
def init_params(dim_in: int, n_labels: int = N_LABELS, seed: int = 1234):
    """Deterministic synthetic FeedForward params (standard orientation, f32)."""
    key = jax.random.PRNGKey(seed)
    k1, k2, k3, k4, k5, k6 = jax.random.split(key, 6)
    s = 1.0 / jnp.sqrt(jnp.float32(dim_in))
    w1 = jax.random.normal(k1, (dim_in, dim_in), jnp.float32) * s
    b1 = jax.random.normal(k4, (dim_in,), jnp.float32) * 0.1
    w2 = jax.random.normal(k2, (dim_in, dim_in), jnp.float32) * s
    b2 = jax.random.normal(k5, (dim_in,), jnp.float32) * 0.1
    w3 = jax.random.normal(k3, (dim_in, n_labels), jnp.float32) * s
    b3 = jax.random.normal(k6, (n_labels,), jnp.float32) * 0.1
    return (w1, b1, w2, b2, w3, b3)


def _prepare_kernel_params(params):
    """Transpose / pad / cast params for the transposed-orientation kernel."""
    w1, b1, w2, b2, w3, b3 = params
    d = w1.shape[0]
    w1t = w1.T.astype(jnp.bfloat16)                                          # (d, d)
    w2t = w2.T.astype(jnp.bfloat16)                                          # (d, d)
    w3t = jnp.zeros((L_PAD, d), jnp.float32).at[:N_LABELS, :].set(w3.T)
    w3t = w3t.astype(jnp.bfloat16)                                           # (L_PAD, d)
    b1t = b1.reshape(d, 1).astype(jnp.float32)
    b2t = b2.reshape(d, 1).astype(jnp.float32)
    # bake the softmax lane mask into the padded logit rows (finite f32 sentinel).
    b3t = jnp.full((L_PAD, 1), -1e30, jnp.float32).at[:N_LABELS, 0].set(
        b3.astype(jnp.float32))
    return (w1t, b1t, w2t, b2t, w3t, b3t)


# --------------------------------------------------------------------------------------
# Hardware-aware sizing
# --------------------------------------------------------------------------------------
def _physical_vmem_bytes():
    try:
        return int(pltpu.get_tpu_info().vmem_capacity_bytes)
    except Exception:
        try:
            kind = jax.devices()[0].device_kind.lower()
        except Exception:
            return 64 * 1024 * 1024
        return 64 * 1024 * 1024 if "v7" in kind else 128 * 1024 * 1024


def _bf16_elementwise_ok():
    """bf16 VPU/EUP exists on v6e/v7x; stay f32 elementwise on v5 and older."""
    try:
        kind = jax.devices()[0].device_kind.lower()
    except Exception:
        return True
    return not any(tag in kind for tag in ("v2", "v3", "v4", "v5"))


def _vmem_estimate(tm, d):
    weights = (2 * d * d + L_PAD * d) * 2            # bf16, single-buffered (Buffered(1))
    biases = (2 * d + L_PAD) * 128 * 4               # (d,1)/(L_PAD,1) f32 pad lanes to 128
    x_tiles = 2 * tm * d * 2                         # double-buffered bf16 activations
    rows = 2 * 3 * 8 * tm * 4                        # lbl/msk/ce (1,tm) rows, sublane-padded
    interm = (2 * d + 2 * L_PAD) * tm * 4            # f32 hT / logitsT temporaries
    return weights + biases + x_tiles + rows + interm


def _choose_tm(M, d, phys_vmem):
    # Bigger tiles amortize per-grid-step overhead; at small d the kernel is
    # overhead/VPU-bound so go wide.
    if d < 128:
        tm = 2048
    elif d <= 1024:
        tm = 1024
    else:
        tm = 512
    tm = min(tm, _round_up(M, 128))
    # keep weights + tiles + temporaries under ~half the physical VMEM (v7x: 64 MiB/TC)
    while tm > 128 and _vmem_estimate(tm, d) > phys_vmem // 2:
        tm //= 2
    tm = max(128, _round_up(tm, 128))
    # v7x has two TensorCores; make sure the parallel row-tile axis has >= 2 tiles.
    if M > 128 and pl.cdiv(M, tm) < 2:
        tm = max(128, _round_up(pl.cdiv(M, 2), 128))
    return tm


# --------------------------------------------------------------------------------------
# pallas_call wrapper
# --------------------------------------------------------------------------------------
def _ce_pallas(x, lbl, msk, kparams, *, tm, vmem_limit, bf16_elementwise, buffered_weights):
    w1t, b1t, w2t, b2t, w3t, b3t = kparams
    d = x.shape[1]
    num_tiles = lbl.shape[0]
    M_pad = num_tiles * tm

    def resident(shape):
        # constant index_map => VMEM-resident; Buffered(1) avoids a duplicate copy.
        if buffered_weights:
            return pl.BlockSpec(shape, lambda i: (0,) * len(shape),
                                pipeline_mode=pl.Buffered(1))
        return pl.BlockSpec(shape, lambda i: (0,) * len(shape))

    flops = 2 * M_pad * (2 * d * d + L_PAD * d)
    transcendentals = M_pad * (2 * d + L_PAD)
    bytes_accessed = (x.size * 2 + lbl.size * 4 + msk.size * 4 + M_pad * 4
                      + (w1t.size + w2t.size + w3t.size) * 2
                      + (b1t.size + b2t.size + b3t.size) * 4)

    kernel = functools.partial(seq_recovery_kernel, bf16_elementwise=bf16_elementwise)
    return pl.pallas_call(
        kernel,
        out_shape=jax.ShapeDtypeStruct((num_tiles, tm), jnp.float32),
        grid=(num_tiles,),
        in_specs=[
            pl.BlockSpec((tm, d), lambda i: (i, 0)),        # x row tiles (streamed, dbl-buf)
            pl.BlockSpec((1, tm), lambda i: (i, 0)),        # labels, lane-dense
            pl.BlockSpec((1, tm), lambda i: (i, 0)),        # mask, lane-dense
            resident((d, d)),                               # w1^T
            resident((d, 1)),                               # b1
            resident((d, d)),                               # w2^T
            resident((d, 1)),                               # b2
            resident((L_PAD, d)),                           # w3^T (label rows padded)
            resident((L_PAD, 1)),                           # b3 (+ -1e30 softmax sentinel)
        ],
        out_specs=pl.BlockSpec((1, tm), lambda i: (i, 0)),  # per-residue masked CE, lane-dense
        compiler_params=pltpu.CompilerParams(
            dimension_semantics=("parallel",),
            vmem_limit_bytes=vmem_limit),
        cost_estimate=pl.CostEstimate(
            flops=int(flops),
            transcendentals=int(transcendentals),
            bytes_accessed=int(bytes_accessed)),
    )(x, lbl, msk, w1t, b1t, w2t, b2t, w3t, b3t)


def sequence_recovery_loss(residue_feats, true_labels, params, mask=None,
                           reduce=True, tm=None):
    """JAX wrapper mirroring SequenceRecoveryLossNet.forward."""
    b, n, d = residue_feats.shape
    assert true_labels.shape == (b, n), f"{residue_feats.shape},{true_labels.shape}"
    if mask is not None:
        assert mask.shape == (b, n), f"{mask.shape},{true_labels.shape}"

    M = b * n
    phys_vmem = _physical_vmem_bytes()
    bf16_elem = _bf16_elementwise_ok()
    TM = _choose_tm(M, d, phys_vmem) if tm is None else max(128, _round_up(tm, 128))
    M_pad = _round_up(M, TM)
    num_tiles = M_pad // TM

    x = residue_feats.reshape(M, d).astype(jnp.bfloat16)
    lbl = true_labels.reshape(M).astype(jnp.int32)
    msk = (jnp.ones((M,), jnp.float32) if mask is None
           else mask.reshape(M).astype(jnp.float32))
    denom = jnp.asarray(float(M), jnp.float32) if mask is None else jnp.sum(msk)
    if M_pad != M:
        pad = M_pad - M
        x = jnp.pad(x, ((0, pad), (0, 0)))
        lbl = jnp.pad(lbl, (0, pad))
        msk = jnp.pad(msk, (0, pad))           # padded residues contribute nothing
    lbl = lbl.reshape(num_tiles, TM)
    msk = msk.reshape(num_tiles, TM)

    kparams = _prepare_kernel_params(params)

    # generation-aware VMEM limit: 2x budget headroom, clamped to 90% of physical VMEM.
    vmem_limit = int(min(max(2 * _vmem_estimate(TM, d), 16 * 1024 * 1024),
                         (phys_vmem * 9) // 10))
    # TODO(synk): for very large dim_in (>~3k), resident d x d weights exceed half of
    # v7x's 64 MiB VMEM; add a K-tiled hidden-dim grid axis with an f32 accumulator
    # instead of shrinking TM further.

    try:
        ce2d = _ce_pallas(x, lbl, msk, kparams, tm=TM, vmem_limit=vmem_limit,
                          bf16_elementwise=bf16_elem, buffered_weights=True)
    except Exception:
        # Buffered(1) (single-buffered resident weights) unavailable -> default pipelining.
        ce2d = _ce_pallas(x, lbl, msk, kparams, tm=TM, vmem_limit=vmem_limit,
                          bf16_elementwise=bf16_elem, buffered_weights=False)

    ce_rows = ce2d.reshape(M_pad)[:M]
    if reduce:
        # mean over masked residues (0/0 -> NaN for an all-False mask, matching torch
        # mean of an empty selection).
        return jnp.sum(ce_rows) / denom
    return ce_rows.reshape(b, n)


# --------------------------------------------------------------------------------------
# Pure-JAX reference (same precision path as the kernel)
# --------------------------------------------------------------------------------------
def _reference(residue_feats, true_labels, params, mask, bf16_elementwise):
    w1, b1, w2, b2, w3, b3 = params
    b, n, d = residue_feats.shape
    x = residue_feats.reshape(-1, d).astype(jnp.bfloat16)
    h = _act(jnp.dot(x, w1.astype(jnp.bfloat16),
                     preferred_element_type=jnp.float32) + b1, bf16_elementwise)
    h = _act(jnp.dot(h, w2.astype(jnp.bfloat16),
                     preferred_element_type=jnp.float32) + b2, bf16_elementwise)
    logits = jnp.dot(h, w3.astype(jnp.bfloat16),
                     preferred_element_type=jnp.float32) + b3
    logp = jax.nn.log_softmax(logits, axis=-1)
    onehot = jax.nn.one_hot(true_labels.reshape(-1), N_LABELS, dtype=jnp.float32)
    ce = -jnp.sum(onehot * logp, axis=-1).reshape(b, n)
    if mask is None:
        return jnp.mean(ce), ce
    m = mask.astype(jnp.float32)
    return jnp.sum(ce * m) / jnp.sum(m), ce * m


if __name__ == "__main__":
    key = jax.random.PRNGKey(0)
    kx, kl, km = jax.random.split(key, 3)

    b, n, d = 2, 8, 32
    residue_feats = jax.random.normal(kx, (b, n, d), jnp.float32)
    true_labels = jax.random.randint(kl, (b, n), 0, N_LABELS)
    mask = jax.random.bernoulli(km, 0.8, (b, n))

    params = init_params(d)

    loss = sequence_recovery_loss(residue_feats, true_labels, params, mask=mask, reduce=True)
    ce_unreduced = sequence_recovery_loss(residue_feats, true_labels, params,
                                          mask=mask, reduce=False)
    jax.block_until_ready((loss, ce_unreduced))

    bf16_elem = _bf16_elementwise_ok()
    ref_loss, ref_ce = _reference(residue_feats, true_labels, params, mask, bf16_elem)
    assert jnp.allclose(loss, ref_loss, rtol=2e-2, atol=2e-2), (loss, ref_loss)
    assert jnp.allclose(ce_unreduced, ref_ce, rtol=2e-2, atol=2e-2)

    # no-mask reduced path
    loss_nm = sequence_recovery_loss(residue_feats, true_labels, params, mask=None, reduce=True)
    ref_nm, _ = _reference(residue_feats, true_labels, params, None, bf16_elem)
    jax.block_until_ready(loss_nm)
    assert jnp.allclose(loss_nm, ref_nm, rtol=2e-2, atol=2e-2), (loss_nm, ref_nm)

    print("KERNEL_OK")
</pallas_src>

<mosaic_0001>
module attributes {stable_mosaic.version = 11 : i64} {
  func.func @seq_recovery_kernel(%arg0: i32, %arg1: memref<128x32xbf16, #tpu.memory_space<vmem>>, %arg2: memref<1x128xi32, #tpu.memory_space<vmem>>, %arg3: memref<1x128xf32, #tpu.memory_space<vmem>>, %arg4: memref<32x32xbf16, #tpu.memory_space<vmem>>, %arg5: memref<32x1xf32, #tpu.memory_space<vmem>>, %arg6: memref<32x32xbf16, #tpu.memory_space<vmem>>, %arg7: memref<32x1xf32, #tpu.memory_space<vmem>>, %arg8: memref<128x32xbf16, #tpu.memory_space<vmem>>, %arg9: memref<128x1xf32, #tpu.memory_space<vmem>>, %arg10: memref<1x128xf32, #tpu.memory_space<vmem>>) attributes {dimension_semantics = [#tpu.dimension_semantics<parallel>], iteration_bounds = array<i64: 1>, scalar_prefetch = 0 : i64, scratch_operands = 0 : i64, tpu.core_type = #tpu.core_type<tc>, window_params = [{transform_indices = @transform_0, window_bounds = array<i64: 128, 32>}, {transform_indices = @transform_1, window_bounds = array<i64: 1, 128>}, {transform_indices = @transform_2, window_bounds = array<i64: 1, 128>}, {pipeline_mode = #tpu.pipeline_mode<synchronous>, transform_indices = @transform_3, window_bounds = array<i64: 32, 32>}, {pipeline_mode = #tpu.pipeline_mode<synchronous>, transform_indices = @transform_4, window_bounds = array<i64: 32, 1>}, {pipeline_mode = #tpu.pipeline_mode<synchronous>, transform_indices = @transform_5, window_bounds = array<i64: 32, 32>}, {pipeline_mode = #tpu.pipeline_mode<synchronous>, transform_indices = @transform_6, window_bounds = array<i64: 32, 1>}, {pipeline_mode = #tpu.pipeline_mode<synchronous>, transform_indices = @transform_7, window_bounds = array<i64: 128, 32>}, {pipeline_mode = #tpu.pipeline_mode<synchronous>, transform_indices = @transform_8, window_bounds = array<i64: 128, 1>}, {transform_indices = @transform_9, window_bounds = array<i64: 1, 128>}]} {
    %c0 = arith.constant 0 : index
    %c0_0 = arith.constant 0 : index
    %0 = vector.load %arg1[%c0, %c0_0] : memref<128x32xbf16, #tpu.memory_space<vmem>>, vector<128x32xbf16>
    %c0_1 = arith.constant 0 : index
    %c0_2 = arith.constant 0 : index
    %1 = vector.load %arg4[%c0_1, %c0_2] : memref<32x32xbf16, #tpu.memory_space<vmem>>, vector<32x32xbf16>
    %cst = arith.constant dense<0.000000e+00> : vector<32x128xf32>
    %2 = tpu.matmul %1, %0, %cst {dimension_numbers = #tpu.dot_dimension_numbers<[1], [1], [0], [0], [0, 0, 1, 0], [], []>} : vector<32x32xbf16>, vector<128x32xbf16>, vector<32x128xf32> -> vector<32x128xf32>
    %c0_3 = arith.constant 0 : index
    %c0_4 = arith.constant 0 : index
    %3 = vector.load %arg5[%c0_3, %c0_4] : memref<32x1xf32, #tpu.memory_space<vmem>>, vector<32x1xf32>
    %4 = vector.broadcast %3 : vector<32x1xf32> to vector<32x128xf32>
    %5 = arith.addf %2, %4 : vector<32x128xf32>
    %6 = arith.truncf %5 : vector<32x128xf32> to vector<32x128xbf16>
    %cst_5 = arith.constant 5.000000e-01 : bf16
    %7 = vector.broadcast %cst_5 : bf16 to vector<32x128xbf16>
    %8 = arith.mulf %7, %6 : vector<32x128xbf16>
    %cst_6 = arith.constant 4.467770e-02 : bf16
    %9 = vector.broadcast %cst_6 : bf16 to vector<32x128xbf16>
    %10 = arith.mulf %9, %6 : vector<32x128xbf16>
    %11 = arith.mulf %10, %6 : vector<32x128xbf16>
    %12 = arith.mulf %11, %6 : vector<32x128xbf16>
    %13 = arith.addf %6, %12 : vector<32x128xbf16>
    %cst_7 = arith.constant 7.968750e-01 : bf16
    %14 = vector.broadcast %cst_7 : bf16 to vector<32x128xbf16>
    %15 = arith.mulf %14, %13 : vector<32x128xbf16>
    %16 = math.tanh %15 : vector<32x128xbf16>
    %cst_8 = arith.constant 1.000000e+00 : bf16
    %17 = vector.broadcast %cst_8 : bf16 to vector<32x128xbf16>
    %18 = arith.addf %17, %16 : vector<32x128xbf16>
    %19 = arith.mulf %8, %18 : vector<32x128xbf16>
    %c0_9 = arith.constant 0 : index
    %c0_10 = arith.constant 0 : index
    %20 = vector.load %arg6[%c0_9, %c0_10] : memref<32x32xbf16, #tpu.memory_space<vmem>>, vector<32x32xbf16>
    %cst_11 = arith.constant dense<0.000000e+00> : vector<32x128xf32>
    %21 = tpu.matmul %20, %19, %cst_11 {dimension_numbers = #tpu.dot_dimension_numbers<[1], [0], [0], [1], [0, 0, 1, 1], [], []>} : vector<32x32xbf16>, vector<32x128xbf16>, vector<32x128xf32> -> vector<32x128xf32>
    %c0_12 = arith.constant 0 : index
    %c0_13 = arith.constant 0 : index
    %22 = vector.load %arg7[%c0_12, %c0_13] : memref<32x1xf32, #tpu.memory_space<vmem>>, vector<32x1xf32>
    %23 = vector.broadcast %22 : vector<32x1xf32> to vector<32x128xf32>
    %24 = arith.addf %21, %23 : vector<32x128xf32>
    %25 = arith.truncf %24 : vector<32x128xf32> to vector<32x128xbf16>
    %cst_14 = arith.constant 5.000000e-01 : bf16
    %26 = vector.broadcast %cst_14 : bf16 to vector<32x128xbf16>
    %27 = arith.mulf %26, %25 : vector<32x128xbf16>
    %cst_15 = arith.constant 4.467770e-02 : bf16
    %28 = vector.broadcast %cst_15 : bf16 to vector<32x128xbf16>
    %29 = arith.mulf %28, %25 : vector<32x128xbf16>
    %30 = arith.mulf %29, %25 : vector<32x128xbf16>
    %31 = arith.mulf %30, %25 : vector<32x128xbf16>
    %32 = arith.addf %25, %31 : vector<32x128xbf16>
    %cst_16 = arith.constant 7.968750e-01 : bf16
    %33 = vector.broadcast %cst_16 : bf16 to vector<32x128xbf16>
    %34 = arith.mulf %33, %32 : vector<32x128xbf16>
    %35 = math.tanh %34 : vector<32x128xbf16>
    %cst_17 = arith.constant 1.000000e+00 : bf16
    %36 = vector.broadcast %cst_17 : bf16 to vector<32x128xbf16>
    %37 = arith.addf %36, %35 : vector<32x128xbf16>
    %38 = arith.mulf %27, %37 : vector<32x128xbf16>
    %c0_18 = arith.constant 0 : index
    %c0_19 = arith.constant 0 : index
    %39 = vector.load %arg8[%c0_18, %c0_19] : memref<128x32xbf16, #tpu.memory_space<vmem>>, vector<128x32xbf16>
    %cst_20 = arith.constant dense<0.000000e+00> : vector<128x128xf32>
    %40 = tpu.matmul %39, %38, %cst_20 {dimension_numbers = #tpu.dot_dimension_numbers<[1], [0], [0], [1], [0, 0, 1, 1], [], []>} : vector<128x32xbf16>, vector<32x128xbf16>, vector<128x128xf32> -> vector<128x128xf32>
    %c0_21 = arith.constant 0 : index
    %c0_22 = arith.constant 0 : index
    %41 = vector.load %arg9[%c0_21, %c0_22] : memref<128x1xf32, #tpu.memory_space<vmem>>, vector<128x1xf32>
    %42 = vector.broadcast %41 : vector<128x1xf32> to vector<128x128xf32>
    %43 = arith.addf %40, %42 : vector<128x128xf32>
    %cst_23 = arith.constant dense<0xFF800000> : vector<128xf32>
    %44 = vector.multi_reduction <maximumf>, %43, %cst_23 [0] : vector<128x128xf32> to vector<128xf32>
    %45 = vector.shape_cast %44 : vector<128xf32> to vector<1x128xf32>
    %46 = vector.broadcast %45 : vector<1x128xf32> to vector<128x128xf32>
    %47 = arith.subf %43, %46 : vector<128x128xf32>
    %48 = math.exp %47 : vector<128x128xf32>
    %cst_24 = arith.constant dense<0.000000e+00> : vector<128xf32>
    %49 = vector.multi_reduction <add>, %48, %cst_24 [0] : vector<128x128xf32> to vector<128xf32>
    %50 = vector.shape_cast %49 : vector<128xf32> to vector<1x128xf32>
    %51 = math.log %50 : vector<1x128xf32>
    %52 = arith.addf %45, %51 : vector<1x128xf32>
    %53 = tpu.iota {dimensions = array<i32: 0>} : vector<128x128xi32>
    %c0_25 = arith.constant 0 : index
    %c0_26 = arith.constant 0 : index
    %54 = vector.load %arg2[%c0_25, %c0_26] : memref<1x128xi32, #tpu.memory_space<vmem>>, vector<1x128xi32>
    %55 = vector.broadcast %54 : vector<1x128xi32> to vector<128x128xi32>
    %56 = arith.cmpi eq, %53, %55 : vector<128x128xi32>
    %57 = arith.extui %56 : vector<128x128xi1> to vector<128x128xi32>
    %58 = arith.sitofp %57 : vector<128x128xi32> to vector<128x128xf32>
    %59 = arith.mulf %58, %43 : vector<128x128xf32>
    %cst_27 = arith.constant dense<0.000000e+00> : vector<128xf32>
    %60 = vector.multi_reduction <add>, %59, %cst_27 [0] : vector<128x128xf32> to vector<128xf32>
    %61 = vector.shape_cast %60 : vector<128xf32> to vector<1x128xf32>
    %62 = arith.subf %52, %61 : vector<1x128xf32>
    %c0_28 = arith.constant 0 : index
    %c0_29 = arith.constant 0 : index
    %63 = vector.load %arg3[%c0_28, %c0_29] : memref<1x128xf32, #tpu.memory_space<vmem>>, vector<1x128xf32>
    %64 = arith.mulf %62, %63 : vector<1x128xf32>
    %c0_30 = arith.constant 0 : index
    %c0_31 = arith.constant 0 : index
    %65 = vector.load %arg10[%c0_30, %c0_31] : memref<1x128xf32, #tpu.memory_space<vmem>>, vector<1x128xf32>
    tpu.vector_store %arg10[%c0_30, %c0_31], %64 {strides = array<i32>} : memref<1x128xf32, #tpu.memory_space<vmem>>, vector<1x128xf32>,
    return
  }
  func.func @transform_0(%arg0: i32) -> (i32, i32) {
    %c0_i32 = arith.constant 0 : i32
    %c0_i32_0 = arith.constant 0 : i32
    return %arg0, %c0_i32 : i32, i32
  }
  func.func @transform_1(%arg0: i32) -> (i32, i32) {
    %c0_i32 = arith.constant 0 : i32
    %c0_i32_0 = arith.constant 0 : i32
    return %arg0, %c0_i32 : i32, i32
  }
  func.func @transform_2(%arg0: i32) -> (i32, i32) {
    %c0_i32 = arith.constant 0 : i32
    %c0_i32_0 = arith.constant 0 : i32
    return %arg0, %c0_i32 : i32, i32
  }
  func.func @transform_3(%arg0: i32) -> (i32, i32) {
    %c0_i32 = arith.constant 0 : i32
    %c0_i32_0 = arith.constant 0 : i32
    %c0_i32_1 = arith.constant 0 : i32
    return %c0_i32, %c0_i32_0 : i32, i32
  }
  func.func @transform_4(%arg0: i32) -> (i32, i32) {
    %c0_i32 = arith.constant 0 : i32
    %c0_i32_0 = arith.constant 0 : i32
    %c0_i32_1 = arith.constant 0 : i32
    return %c0_i32, %c0_i32_0 : i32, i32
  }
  func.func @transform_5(%arg0: i32) -> (i32, i32) {
    %c0_i32 = arith.constant 0 : i32
    %c0_i32_0 = arith.constant 0 : i32
    %c0_i32_1 = arith.constant 0 : i32
    return %c0_i32, %c0_i32_0 : i32, i32
  }
  func.func @transform_6(%arg0: i32) -> (i32, i32) {
    %c0_i32 = arith.constant 0 : i32
    %c0_i32_0 = arith.constant 0 : i32
    %c0_i32_1 = arith.constant 0 : i32
    return %c0_i32, %c0_i32_0 : i32, i32
  }
  func.func @transform_7(%arg0: i32) -> (i32, i32) {
    %c0_i32 = arith.constant 0 : i32
    %c0_i32_0 = arith.constant 0 : i32
    %c0_i32_1 = arith.constant 0 : i32
    return %c0_i32, %c0_i32_0 : i32, i32
  }
  func.func @transform_8(%arg0: i32) -> (i32, i32) {
    %c0_i32 = arith.constant 0 : i32
    %c0_i32_0 = arith.constant 0 : i32
    %c0_i32_1 = arith.constant 0 : i32
    return %c0_i32, %c0_i32_0 : i32, i32
  }
  func.func @transform_9(%arg0: i32) -> (i32, i32) {
    %c0_i32 = arith.constant 0 : i32
    %c0_i32_0 = arith.constant 0 : i32
    return %arg0, %c0_i32 : i32, i32
  }
}

module attributes {stable_mosaic.version = 11 : i64} {
  func.func @seq_recovery_kernel(%arg0: i32, %arg1: memref<128x32xbf16, #tpu.memory_space<vmem>>, %arg2: memref<1x128xi32, #tpu.memory_space<vmem>>, %arg3: memref<1x128xf32, #tpu.memory_space<vmem>>, %arg4: memref<32x32xbf16, #tpu.memory_space<vmem>>, %arg5: memref<32x1xf32, #tpu.memory_space<vmem>>, %arg6: memref<32x32xbf16, #tpu.memory_space<vmem>>, %arg7: memref<32x1xf32, #tpu.memory_space<vmem>>, %arg8: memref<128x32xbf16, #tpu.memory_space<vmem>>, %arg9: memref<128x1xf32, #tpu.memory_space<vmem>>, %arg10: memref<1x128xf32, #tpu.memory_space<vmem>>) attributes {dimension_semantics = [#tpu.dimension_semantics<parallel>], iteration_bounds = array<i64: 1>, scalar_prefetch = 0 : i64, scratch_operands = 0 : i64, tpu.core_type = #tpu.core_type<tc>, window_params = [{transform_indices = @transform_0, window_bounds = array<i64: 128, 32>}, {transform_indices = @transform_1, window_bounds = array<i64: 1, 128>}, {transform_indices = @transform_2, window_bounds = array<i64: 1, 128>}, {pipeline_mode = #tpu.pipeline_mode<synchronous>, transform_indices = @transform_3, window_bounds = array<i64: 32, 32>}, {pipeline_mode = #tpu.pipeline_mode<synchronous>, transform_indices = @transform_4, window_bounds = array<i64: 32, 1>}, {pipeline_mode = #tpu.pipeline_mode<synchronous>, transform_indices = @transform_5, window_bounds = array<i64: 32, 32>}, {pipeline_mode = #tpu.pipeline_mode<synchronous>, transform_indices = @transform_6, window_bounds = array<i64: 32, 1>}, {pipeline_mode = #tpu.pipeline_mode<synchronous>, transform_indices = @transform_7, window_bounds = array<i64: 128, 32>}, {pipeline_mode = #tpu.pipeline_mode<synchronous>, transform_indices = @transform_8, window_bounds = array<i64: 128, 1>}, {transform_indices = @transform_9, window_bounds = array<i64: 1, 128>}]} {
    %c0 = arith.constant 0 : index
    %c0_0 = arith.constant 0 : index
    %0 = vector.load %arg1[%c0, %c0_0] : memref<128x32xbf16, #tpu.memory_space<vmem>>, vector<128x32xbf16>
    %c0_1 = arith.constant 0 : index
    %c0_2 = arith.constant 0 : index
    %1 = vector.load %arg4[%c0_1, %c0_2] : memref<32x32xbf16, #tpu.memory_space<vmem>>, vector<32x32xbf16>
    %cst = arith.constant dense<0.000000e+00> : vector<32x128xf32>
    %2 = tpu.matmul %1, %0, %cst {dimension_numbers = #tpu.dot_dimension_numbers<[1], [1], [0], [0], [0, 0, 1, 0], [], []>} : vector<32x32xbf16>, vector<128x32xbf16>, vector<32x128xf32> -> vector<32x128xf32>
    %c0_3 = arith.constant 0 : index
    %c0_4 = arith.constant 0 : index
    %3 = vector.load %arg5[%c0_3, %c0_4] : memref<32x1xf32, #tpu.memory_space<vmem>>, vector<32x1xf32>
    %4 = vector.broadcast %3 : vector<32x1xf32> to vector<32x128xf32>
    %5 = arith.addf %2, %4 : vector<32x128xf32>
    %6 = arith.truncf %5 : vector<32x128xf32> to vector<32x128xbf16>
    %cst_5 = arith.constant 5.000000e-01 : bf16
    %7 = vector.broadcast %cst_5 : bf16 to vector<32x128xbf16>
    %8 = arith.mulf %7, %6 : vector<32x128xbf16>
    %cst_6 = arith.constant 4.467770e-02 : bf16
    %9 = vector.broadcast %cst_6 : bf16 to vector<32x128xbf16>
    %10 = arith.mulf %9, %6 : vector<32x128xbf16>
    %11 = arith.mulf %10, %6 : vector<32x128xbf16>
    %12 = arith.mulf %11, %6 : vector<32x128xbf16>
    %13 = arith.addf %6, %12 : vector<32x128xbf16>
    %cst_7 = arith.constant 7.968750e-01 : bf16
    %14 = vector.broadcast %cst_7 : bf16 to vector<32x128xbf16>
    %15 = arith.mulf %14, %13 : vector<32x128xbf16>
    %16 = math.tanh %15 : vector<32x128xbf16>
    %cst_8 = arith.constant 1.000000e+00 : bf16
    %17 = vector.broadcast %cst_8 : bf16 to vector<32x128xbf16>
    %18 = arith.addf %17, %16 : vector<32x128xbf16>
    %19 = arith.mulf %8, %18 : vector<32x128xbf16>
    %c0_9 = arith.constant 0 : index
    %c0_10 = arith.constant 0 : index
    %20 = vector.load %arg6[%c0_9, %c0_10] : memref<32x32xbf16, #tpu.memory_space<vmem>>, vector<32x32xbf16>
    %cst_11 = arith.constant dense<0.000000e+00> : vector<32x128xf32>
    %21 = tpu.matmul %20, %19, %cst_11 {dimension_numbers = #tpu.dot_dimension_numbers<[1], [0], [0], [1], [0, 0, 1, 1], [], []>} : vector<32x32xbf16>, vector<32x128xbf16>, vector<32x128xf32> -> vector<32x128xf32>
    %c0_12 = arith.constant 0 : index
    %c0_13 = arith.constant 0 : index
    %22 = vector.load %arg7[%c0_12, %c0_13] : memref<32x1xf32, #tpu.memory_space<vmem>>, vector<32x1xf32>
    %23 = vector.broadcast %22 : vector<32x1xf32> to vector<32x128xf32>
    %24 = arith.addf %21, %23 : vector<32x128xf32>
    %25 = arith.truncf %24 : vector<32x128xf32> to vector<32x128xbf16>
    %cst_14 = arith.constant 5.000000e-01 : bf16
    %26 = vector.broadcast %cst_14 : bf16 to vector<32x128xbf16>
    %27 = arith.mulf %26, %25 : vector<32x128xbf16>
    %cst_15 = arith.constant 4.467770e-02 : bf16
    %28 = vector.broadcast %cst_15 : bf16 to vector<32x128xbf16>
    %29 = arith.mulf %28, %25 : vector<32x128xbf16>
    %30 = arith.mulf %29, %25 : vector<32x128xbf16>
    %31 = arith.mulf %30, %25 : vector<32x128xbf16>
    %32 = arith.addf %25, %31 : vector<32x128xbf16>
    %cst_16 = arith.constant 7.968750e-01 : bf16
    %33 = vector.broadcast %cst_16 : bf16 to vector<32x128xbf16>
    %34 = arith.mulf %33, %32 : vector<32x128xbf16>
    %35 = math.tanh %34 : vector<32x128xbf16>
    %cst_17 = arith.constant 1.000000e+00 : bf16
    %36 = vector.broadcast %cst_17 : bf16 to vector<32x128xbf16>
    %37 = arith.addf %36, %35 : vector<32x128xbf16>
    %38 = arith.mulf %27, %37 : vector<32x128xbf16>
    %c0_18 = arith.constant 0 : index
    %c0_19 = arith.constant 0 : index
    %39 = vector.load %arg8[%c0_18, %c0_19] : memref<128x32xbf16, #tpu.memory_space<vmem>>, vector<128x32xbf16>
    %cst_20 = arith.constant dense<0.000000e+00> : vector<128x128xf32>
    %40 = tpu.matmul %39, %38, %cst_20 {dimension_numbers = #tpu.dot_dimension_numbers<[1], [0], [0], [1], [0, 0, 1, 1], [], []>} : vector<128x32xbf16>, vector<32x128xbf16>, vector<128x128xf32> -> vector<128x128xf32>
    %c0_21 = arith.constant 0 : index
    %c0_22 = arith.constant 0 : index
    %41 = vector.load %arg9[%c0_21, %c0_22] : memref<128x1xf32, #tpu.memory_space<vmem>>, vector<128x1xf32>
    %42 = vector.broadcast %41 : vector<128x1xf32> to vector<128x128xf32>
    %43 = arith.addf %40, %42 : vector<128x128xf32>
    %cst_23 = arith.constant dense<0xFF800000> : vector<128xf32>
    %44 = vector.multi_reduction <maximumf>, %43, %cst_23 [0] : vector<128x128xf32> to vector<128xf32>
    %45 = vector.shape_cast %44 : vector<128xf32> to vector<1x128xf32>
    %46 = vector.broadcast %45 : vector<1x128xf32> to vector<128x128xf32>
    %47 = arith.subf %43, %46 : vector<128x128xf32>
    %48 = math.exp %47 : vector<128x128xf32>
    %cst_24 = arith.constant dense<0.000000e+00> : vector<128xf32>
    %49 = vector.multi_reduction <add>, %48, %cst_24 [0] : vector<128x128xf32> to vector<128xf32>
    %50 = vector.shape_cast %49 : vector<128xf32> to vector<1x128xf32>
    %51 = math.log %50 : vector<1x128xf32>
    %52 = arith.addf %45, %51 : vector<1x128xf32>
    %53 = tpu.iota {dimensions = array<i32: 0>} : vector<128x128xi32>
    %c0_25 = arith.constant 0 : index
    %c0_26 = arith.constant 0 : index
    %54 = vector.load %arg2[%c0_25, %c0_26] : memref<1x128xi32, #tpu.memory_space<vmem>>, vector<1x128xi32>
    %55 = vector.broadcast %54 : vector<1x128xi32> to vector<128x128xi32>
    %56 = arith.cmpi eq, %53, %55 : vector<128x128xi32>
    %57 = arith.extui %56 : vector<128x128xi1> to vector<128x128xi32>
    %58 = arith.sitofp %57 : vector<128x128xi32> to vector<128x128xf32>
    %59 = arith.mulf %58, %43 : vector<128x128xf32>
    %cst_27 = arith.constant dense<0.000000e+00> : vector<128xf32>
    %60 = vector.multi_reduction <add>, %59, %cst_27 [0] : vector<128x128xf32> to vector<128xf32>
    %61 = vector.shape_cast %60 : vector<128xf32> to vector<1x128xf32>
    %62 = arith.subf %52, %61 : vector<1x128xf32>
    %c0_28 = arith.constant 0 : index
    %c0_29 = arith.constant 0 : index
    %63 = vector.load %arg3[%c0_28, %c0_29] : memref<1x128xf32, #tpu.memory_space<vmem>>, vector<1x128xf32>
    %64 = arith.mulf %62, %63 : vector<1x128xf32>
    %c0_30 = arith.constant 0 : index
    %c0_31 = arith.constant 0 : index
    %65 = vector.load %arg10[%c0_30, %c0_31] : memref<1x128xf32, #tpu.memory_space<vmem>>, vector<1x128xf32>
    tpu.vector_store %arg10[%c0_30, %c0_31], %64 {strides = array<i32>} : memref<1x128xf32, #tpu.memory_space<vmem>>, vector<1x128xf32>,
    return
  }
  func.func @transform_0(%arg0: i32) -> (i32, i32) {
    %c0_i32 = arith.constant 0 : i32
    %c0_i32_0 = arith.constant 0 : i32
    return %arg0, %c0_i32 : i32, i32
  }
  func.func @transform_1(%arg0: i32) -> (i32, i32) {
    %c0_i32 = arith.constant 0 : i32
    %c0_i32_0 = arith.constant 0 : i32
    return %arg0, %c0_i32 : i32, i32
  }
  func.func @transform_2(%arg0: i32) -> (i32, i32) {
    %c0_i32 = arith.constant 0 : i32
    %c0_i32_0 = arith.constant 0 : i32
    return %arg0, %c0_i32 : i32, i32
  }
  func.func @transform_3(%arg0: i32) -> (i32, i32) {
    %c0_i32 = arith.constant 0 : i32
    %c0_i32_0 = arith.constant 0 : i32
    %c0_i32_1 = arith.constant 0 : i32
    return %c0_i32, %c0_i32_0 : i32, i32
  }
  func.func @transform_4(%arg0: i32) -> (i32, i32) {
    %c0_i32 = arith.constant 0 : i32
    %c0_i32_0 = arith.constant 0 : i32
    %c0_i32_1 = arith.constant 0 : i32
    return %c0_i32, %c0_i32_0 : i32, i32
  }
  func.func @transform_5(%arg0: i32) -> (i32, i32) {
    %c0_i32 = arith.constant 0 : i32
    %c0_i32_0 = arith.constant 0 : i32
    %c0_i32_1 = arith.constant 0 : i32
    return %c0_i32, %c0_i32_0 : i32, i32
  }
  func.func @transform_6(%arg0: i32) -> (i32, i32) {
    %c0_i32 = arith.constant 0 : i32
    %c0_i32_0 = arith.constant 0 : i32
    %c0_i32_1 = arith.constant 0 : i32
    return %c0_i32, %c0_i32_0 : i32, i32
  }
  func.func @transform_7(%arg0: i32) -> (i32, i32) {
    %c0_i32 = arith.constant 0 : i32
    %c0_i32_0 = arith.constant 0 : i32
    %c0_i32_1 = arith.constant 0 : i32
    return %c0_i32, %c0_i32_0 : i32, i32
  }
  func.func @transform_8(%arg0: i32) -> (i32, i32) {
    %c0_i32 = arith.constant 0 : i32
    %c0_i32_0 = arith.constant 0 : i32
    %c0_i32_1 = arith.constant 0 : i32
    return %c0_i32, %c0_i32_0 : i32, i32
  }
  func.func @transform_9(%arg0: i32) -> (i32, i32) {
    %c0_i32 = arith.constant 0 : i32
    %c0_i32_0 = arith.constant 0 : i32
    return %arg0, %c0_i32 : i32, i32
  }
}

</mosaic_0001>

<bundles_post_ra>
// kernel: tpu_custom_call.1
= control target key start
LH: loop header
LB: loop body
LE: loop exit
PB: predicated region body
PF: predicated region fallthrough
CT: control target
= control target key end

     0   :  { %vm132_vm0 = vcmask 261120   ;;  %v1056_v3 = vmov 0   ;;  %s1450_s0 = inlined_call_operand.vmem [shape: bf16[128,32], index: 0, kind: input, shape index: {}]   ;;  %s1451_s1 = inlined_call_operand.vmem [shape: s32[1,128], index: 1, kind: input, shape index: {}]   ;;  %s1452_s2 = inlined_call_operand.vmem [shape: f32[1,128], index: 2, kind: input, shape index: {}]   ;;  %s1453_s3 = inlined_call_operand.vmem [shape: bf16[32,32], index: 3, kind: input, shape index: {}]   ;;  %s1454_s4 = inlined_call_operand.vmem [shape: f32[32,1], index: 4, kind: input, shape index: {}]   ;;  %s1455_s5 = inlined_call_operand.vmem [shape: bf16[32,32], index: 5, kind: input, shape index: {}]   ;;  %s1456_s6 = inlined_call_operand.vmem [shape: f32[32,1], index: 6, kind: input, shape index: {}]   ;;  %s1457_s7 = inlined_call_operand.vmem [shape: bf16[128,32], index: 7, kind: input, shape index: {}]   ;;  %s1458_s8 = inlined_call_operand.vmem [shape: f32[128,1], index: 8, kind: input, shape index: {}]   ;;  %s1459_s9 = inlined_call_operand.hbm [shape: f32[1,128], index: 9, kind: output, shape index: {}]  }
   0x1   :  { %v970_v0 = vld [vmem:[%s1450_s0] sm:$0xff]   ;;  %v971_v1 = vld [vmem:[%s1450_s0 + $0x8] sm:$0xff]   ;;  %968 = vset.pattern.permute.xlu0 %v1056_v3  ;;  %969 = vset.pattern.permute.xlu1 %v1056_v3  ;;  %v972_v4 = vld [vmem:[%s1450_s0 + $0x10] sm:$0xff]  }
   0x2   :  { %957 = vmatprep.subr.msk.bf16.mxu0 %vm132_vm0, %v970_v0  ;;  %v140_v2 = vsel %vm132_vm0, %v970_v0, 0  ;;  %v143_v5 = vsel %vm132_vm0, %v971_v1, 0  ;;  %v978_v6 = vld [vmem:[%s1453_s3] sm:$0xff]   ;;  %v60_v8 = vld [vmem:[%s1454_s4 + $0x10] sm:$0xff]  ;;  %v59_v9 = vld [vmem:[%s1454_s4 + $0x8] sm:$0xff]  ;;  %v146_v12 = vsel %vm132_vm0, %v972_v4, 0 }
   0x3   :  { %910 = vmatpush3.bf16.xpose.msra.mxu0 %v140_v2  ;;  %925 = vmatprep.mubr.msk.bf16.mxu0 %vm132_vm0, %v978_v6  ;;  %v58_v7 = vld [vmem:[%s1454_s4] sm:$0xff]  ;;  %v973_v10 = vld [vmem:[%s1450_s0 + $0x18] sm:$0xff]   ;;  %v237_v15 = vld [vmem:[%s1456_s6 + $0x8] sm:$0xff] }
   0x4   :  { %958 = vmatprep.subr.msk.bf16.mxu0 %vm132_vm0, %v971_v1  ;;  %64 = vperm.xlu0 %968, %v58_v7   ;;  %v61_v11 = vld [vmem:[%s1454_s4 + $0x18] sm:$0xff]  ;;  %v236_v13 = vld [vmem:[%s1456_s6] sm:$0xff]  ;;  %v149_v14 = vsel %vm132_vm0, %v973_v10, 0  ;;  %v238_v16 = vld [vmem:[%s1456_s6 + $0x10] sm:$0xff] }
   0x5   :  { %74 = vperm.xlu1 %969, %v60_v8   ;;  %v239_v17 = vld [vmem:[%s1456_s6 + $0x18] sm:$0xff]  ;;  %v974_v18 = vld [vmem:[%s1450_s0 + $0x20] sm:$0xff]  }
   0x6   :  { %v361_v19 = vld [vmem:[%s1458_s8] sm:$0xff] }
   0x8   :  { %69 = vperm.xlu0 %968, %v59_v9  }
   0x9   :  { %79 = vperm.xlu1 %969, %v61_v11  }
   0xb   :  { %912 = vmatpush3.bf16.xpose.msra.mxu0 %v143_v5 }
   0xc   :  { %959 = vmatprep.subr.msk.bf16.mxu0 %vm132_vm0, %v972_v4  ;;  %242 = vperm.xlu0 %968, %v236_v13  }
   0xd   :  { %247 = vperm.xlu1 %969, %v237_v15  }
  0x10   :  { %252 = vperm.xlu0 %968, %v238_v16  }
  0x11   :  { %257 = vperm.xlu1 %969, %v239_v17  }
  0x13   :  { %914 = vmatpush3.bf16.xpose.msra.mxu0 %v146_v12 }
  0x14   :  { %960 = vmatprep.subr.msk.bf16.mxu0 %vm132_vm0, %v973_v10 }
  0x15   :  { %14 = vsyncpa [#allocation3], 0  ;;  %v362_v20 = vld [vmem:[%s1458_s8 + $0x8] sm:$0xff]  ;;  %379 = vperm.xlu0 %968, %v361_v19   ;;  %v363_v21 = vld [vmem:[%s1458_s8 + $0x10] sm:$0xff]  ;;  %v152_v23 = vsel %vm132_vm0, %v974_v18, 0  ;;  %s1058_s26 = smov [#allocation2]  }
  0x16   :  { %384 = vperm.xlu1 %969, %v362_v20   ;;  %v364_v22 = vld [vmem:[%s1458_s8 + $0x18] sm:$0xff]  ;;  %v975_v24 = vld [vmem:[%s1450_s0 + $0x28] sm:$0xff]   ;;  %v365_v25 = vld [vmem:[%s1458_s8 + $0x20] sm:$0xff]  ;;  %s828_s27 = sshll.u32 %s1058_s26, 4  ;;  %s829_s27 = int_to_ptr.vmem [resolvable:$true] %s828_s27 }
  0x17   :  { %v366_v26 = vld [vmem:[%s1458_s8 + $0x28] sm:$0xff]  ;;  %v367_v27 = vld [vmem:[%s1458_s8 + $0x30] sm:$0xff]  ;;  %v368_v28 = vld [vmem:[%s1458_s8 + $0x38] sm:$0xff]  ;;  %v155_v29 = vsel %vm132_vm0, %v975_v24, 0  ;;  %s1036_s28 = scalar_lea.vmem %s829_s27, 32  ;;  %p1037_p1 = scmp.lt.s32.totalorder %s829_s27, %s829_s27 }
  0x18   :  { %v976_v30 = vld [vmem:[%s1450_s0 + $0x30] sm:$0xff]   ;;  %v369_v31 = vld [vmem:[%s1458_s8 + $0x40] sm:$0xff]  ;;  %v370_v32 = vld [vmem:[%s1458_s8 + $0x48] sm:$0xff] }
  0x19   :  { %389 = vperm.xlu0 %968, %v363_v21   ;;  %v371_v33 = vld [vmem:[%s1458_s8 + $0x50] sm:$0xff]  ;;  %v372_v34 = vld [vmem:[%s1458_s8 + $0x58] sm:$0xff]  ;;  %v158_v35 = vsel %vm132_vm0, %v976_v30, 0  ;;  %v373_v37 = vld [vmem:[%s1458_s8 + $0x60] sm:$0xff] }
  0x1a   :  { %394 = vperm.xlu1 %969, %v364_v22   ;;  %v977_v36 = vld [vmem:[%s1450_s0 + $0x38] sm:$0xff]   ;;  %v374_v38 = vld [vmem:[%s1458_s8 + $0x68] sm:$0xff]  ;;  %v375_v39 = vld [vmem:[%s1458_s8 + $0x70] sm:$0xff]  ;;  %s1032_s0 = scalar_lea.vmem %s829_s27, 16 }
  0x1b   :  { %916 = vmatpush3.bf16.xpose.msra.mxu0 %v149_v14  ;;  %v376_v40 = vld [vmem:[%s1458_s8 + $0x78] sm:$0xff]  ;;  %v161_v41 = vsel %vm132_vm0, %v977_v36, 0  ;;  %v979_v42 = vld [vmem:[%s1453_s3 + $0x8] sm:$0xff]   ;;  %v980_v43 = vld [vmem:[%s1455_s5] sm:$0xff]   ;;  %p1033_p0 = scmp.ne.s32.totalorder %s829_s27, %s1032_s0  ;;  %p1038_p2 = scmp.lt.s32.totalorder %s1036_s28, %s1032_s0 }
  0x1c   :  { %961 = vmatprep.subr.msk.bf16.mxu0 %vm132_vm0, %v974_v18  ;;  %933 = vmatprep.mubr.msk.bf16.mxu1 %vm132_vm0, %v980_v43  ;;  %v981_v12 = vld [vmem:[%s1455_s5 + $0x8] sm:$0xff]   ;;  %v982_v13 = vld [vmem:[%s1457_s7] sm:$0xff]  }
  0x1d   :  { %399 = vperm.xlu0 %968, %v365_v25   ;;  %p1039_p3 = por %p1038_p2, %p1037_p1 }
  0x1e   :  { %404 = vperm.xlu1 %969, %v366_v26  }
  0x1f   :  { %p1040_p4 = pnand %p1039_p3, %p1033_p0 }
  0x21   :  { %409 = vperm.xlu0 %968, %v367_v27  }
  0x22   :  { %414 = vperm.xlu1 %969, %v368_v28  }
  0x23   :  { %918 = vmatpush3.bf16.xpose.msra.mxu0 %v152_v23 }
  0x24   :  { %962 = vmatprep.subr.msk.bf16.mxu0 %vm132_vm0, %v975_v24 }
  0x25   :  { %419 = vperm.xlu0 %968, %v369_v31  }
  0x26   :  { %424 = vperm.xlu1 %969, %v370_v32  }
  0x29   :  { %429 = vperm.xlu0 %968, %v371_v33  }
  0x2a   :  { %434 = vperm.xlu1 %969, %v372_v34  }
  0x2b   :  { %920 = vmatpush3.bf16.xpose.msra.mxu0 %v155_v29 }
  0x2c   :  { %963 = vmatprep.subr.msk.bf16.mxu0 %vm132_vm0, %v976_v30 }
  0x2d   :  { %439 = vperm.xlu0 %968, %v373_v37  }
  0x2e   :  { %444 = vperm.xlu1 %969, %v374_v38  }
  0x31   :  { %449 = vperm.xlu0 %968, %v375_v39  }
  0x32   :  { %454 = vperm.xlu1 %969, %v376_v40  }
  0x33   :  { %922 = vmatpush3.bf16.xpose.msra.mxu0 %v158_v35 }
  0x34   :  { %964 = vmatprep.subr.msk.bf16.mxu0 %vm132_vm0, %v977_v36 }
  0x3b   :  { %924 = vmatpush3.bf16.xpose.msra.mxu0 %v161_v41 }
  0x42   :  { %926 = vmatmul.mubr.msk.bf16.vlgmr.msra.gmra.mrb[0].mxu0 %vm132_vm0, %v979_v42 }
  0x83   :  { %v65_v45 = vpop.permute.xlu0 %64 }
  0x84   :  { %v75_v44 = vpop.permute.xlu1 %74 }
  0x87   :  { %v70_v50 = vpop.permute.xlu0 %69 }
  0x88   :  { %v80_v48 = vpop.permute.xlu1 %79 }
  0x8b   :  { %v243_v14 = vpop.permute.xlu0 %242 }
  0x8c   :  { %v248_v15 = vpop.permute.xlu1 %247 }
  0x8f   :  { %v253_v17 = vpop.permute.xlu0 %252 }
  0x90   :  { %v258_v19 = vpop.permute.xlu1 %257 }
 0x115   :  { %v927_v46 = vpop.f32.mrb[0].mxu0 }
 0x116   :  { %v197_v47 = vpop.f32.mrb[1].mxu0  ;;  %v206_v51 = vadd.f32 %v927_v46, %v75_v44  ;;  %v983_v46 = vld [vmem:[%s1457_s7 + $0x8] sm:$0xff]  }
 0x117   :  { %v928_v49 = vpop.f32.mrb[2].mxu0  ;;  %v198_v54 = vadd.f32 %v197_v47, %v65_v45  ;;  %v984_v47 = vld [vmem:[%s1457_s7 + $0x10] sm:$0xff]  }
 0x118   :  { %v209_v52 = vadd.f32 %v928_v49, %v80_v48  ;;  %v200_v53 = vpop.f32.mrb[3].mxu0  ;;  %v985_v48 = vld [vmem:[%s1457_s7 + $0x18] sm:$0xff]   ;;  %v986_v49 = vld [vmem:[%s1457_s7 + $0x20] sm:$0xff]  }
 0x119   :  { %v201_v55 = vadd.f32 %v200_v53, %v70_v50  ;;  %v987_v50 = vld [vmem:[%s1457_s7 + $0x28] sm:$0xff]   ;;  %v380_v53 = vpop.permute.xlu0 %379 }
 0x11a   :  { %v213_v56 = vpack.c.bf16 %v209_v52, %v206_v51  ;;  %v988_v51 = vld [vmem:[%s1457_s7 + $0x30] sm:$0xff]   ;;  %v989_v52 = vld [vmem:[%s1457_s7 + $0x38] sm:$0xff]  }
 0x11b   :  { %v212_v57 = vpack.c.bf16 %v201_v55, %v198_v54  ;;  %v385_v54 = vpop.permute.xlu1 %384 }
 0x11c   :  { %v217_v58 = vmul.bf16 1027030327, %v213_v56  ;;  %v215_v10 = vmul.bf16 1056980736, %v213_v56 }
 0x11d   :  { %v216_v59 = vmul.bf16 1027030327, %v212_v57  ;;  %v214_v6 = vmul.bf16 1056980736, %v212_v57  ;;  %v390_v55 = vpop.permute.xlu0 %389 }
 0x11e   :  { %v219_v60 = vmul.bf16 %v217_v58, %v213_v56 }
 0x11f   :  { %v218_v61 = vmul.bf16 %v216_v59, %v212_v57 }
 0x120   :  { %v221_v62 = vmul.bf16 %v219_v60, %v213_v56 }
 0x121   :  { %v220_v63 = vmul.bf16 %v218_v61, %v212_v57  ;;  %v400_v58 = vpop.permute.xlu0 %399 }
 0x122   :  { %v223_v0 = vadd.bf16 %v221_v62, %v213_v56  ;;  %v395_v56 = vpop.permute.xlu1 %394  ;;  %v1275_v62 = vld [vmem:[%s1451_s1] ss:$0 sm:$0xff] }
 0x123   :  { %v222_v1 = vadd.bf16 %v220_v63, %v212_v57  ;;  %v711_v57 = vlaneseq }
 0x124   :  { %v225_v2 = vmul.bf16 1061961548, %v223_v0 }
 0x125   :  { %v224_v3 = vmul.bf16 1061961548, %v222_v1  ;;  %v1269_v59 = vshrl.u32 %v711_v57, 7  ;;  %v410_v0 = vpop.permute.xlu0 %409 }
 0x126   :  { %990 = vtanh.bf16 %v225_v2  ;;  %v405_v60 = vpop.permute.xlu1 %404 }
 0x127   :  { %992 = vtanh.bf16 %v224_v3  ;;  %v713_v61 = vadd.s32 8, %v1269_v59  ;;  %v714_v63 = vadd.s32 16, %v1269_v59  ;;  %vm733_vm1 = vcmp.eq.s32.totalorder %v1269_v59, %v1275_v62 }
 0x128   :  { %v715_v2 = vadd.s32 24, %v1269_v59 }
 0x129   :  { %vm734_vm2 = vcmp.eq.s32.totalorder %v713_v61, %v1275_v62  ;;  %vm735_vm3 = vcmp.eq.s32.totalorder %v714_v63, %v1275_v62 }
 0x12a   :  { %vm736_vm4 = vcmp.eq.s32.totalorder %v715_v2, %v1275_v62 }
 0x131   :  { %v991_v4 = vpop.eup %990 }
 0x132   :  { %v993_v5 = vpop.eup %992  ;;  %v229_v8 = vadd.bf16 1065369472, %v991_v4  ;;  %v415_v4 = vpop.permute.xlu1 %414 }
 0x133   :  { %v228_v7 = vadd.bf16 1065369472, %v993_v5 }
 0x134   :  { %v231_v11 = vmul.bf16 %v229_v8, %v215_v10  ;;  %v1057_v8 = vmov 0.0  }
 0x135   :  { %v230_v9 = vmul.bf16 %v228_v7, %v214_v6  ;;  %v716_v7 = vadd.s32 32, %v1269_v59 }
 0x137   :  { %929 = vmatprep.subr.bf16.mxu1 %v230_v9  ;;  %vm737_vm5 = vcmp.eq.s32.totalorder %v716_v7, %v1275_v62 }
 0x138   :  { %930 = vmatpush3.bf16.msra.mxu1 %v230_v9  ;;  %v869_v9 = vsel %vm733_vm1, 1.0, %v1057_v8 }
 0x139   :  { %931 = vmatprep.subr.bf16.mxu1 %v231_v11 }
 0x13c   :  { %932 = vmatpush3.bf16.msra.mxu1 %v231_v11  ;;  %v870_v11 = vsel %vm734_vm2, 1.0, %v1057_v8 }
 0x13f   :  { %934 = vmatmul.mubr.msk.bf16.vlgmr.msra.gmra.mrb[0].mxu1 %vm132_vm0, %v981_v12 }
 0x140   :  { %941 = vmatprep.mubr.msk.bf16.mxu1 %vm132_vm0, %v982_v13 }
 0x212   :  { %v935_v16 = vpop.f32.mrb[0].mxu1 }
 0x213   :  { %v310_v18 = vpop.f32.mrb[1].mxu1  ;;  %v319_v21 = vadd.f32 %v935_v16, %v253_v17  ;;  %v718_v16 = vadd.s32 48, %v1269_v59  ;;  %v719_v17 = vadd.s32 56, %v1269_v59 }
 0x214   :  { %v936_v20 = vpop.f32.mrb[2].mxu1  ;;  %v311_v24 = vadd.f32 %v310_v18, %v243_v14  ;;  %v717_v14 = vadd.s32 40, %v1269_v59  ;;  %v420_v18 = vpop.permute.xlu0 %419 }
 0x215   :  { %v322_v22 = vadd.f32 %v936_v20, %v258_v19  ;;  %v313_v23 = vpop.f32.mrb[3].mxu1  ;;  %vm739_vm7 = vcmp.eq.s32.totalorder %v718_v16, %v1275_v62  ;;  %vm740_vm8 = vcmp.eq.s32.totalorder %v719_v17, %v1275_v62 }
 0x216   :  { %v314_v25 = vadd.f32 %v313_v23, %v248_v15  ;;  %v871_v15 = vsel %vm735_vm3, 1.0, %v1057_v8  ;;  %v425_v23 = vpop.permute.xlu1 %424  ;;  %vm738_vm6 = vcmp.eq.s32.totalorder %v717_v14, %v1275_v62 }
 0x217   :  { %v326_v26 = vpack.c.bf16 %v322_v22, %v319_v21  ;;  %v872_v22 = vsel %vm736_vm4, 1.0, %v1057_v8 }
 0x218   :  { %v325_v27 = vpack.c.bf16 %v314_v25, %v311_v24 }
 0x219   :  { %v330_v28 = vmul.bf16 1027030327, %v326_v26  ;;  %v328_v44 = vmul.bf16 1056980736, %v326_v26 }
 0x21a   :  { %v329_v29 = vmul.bf16 1027030327, %v325_v27  ;;  %v327_v40 = vmul.bf16 1056980736, %v325_v27 }
 0x21b   :  { %v332_v30 = vmul.bf16 %v330_v28, %v326_v26 }
 0x21c   :  { %v331_v31 = vmul.bf16 %v329_v29, %v325_v27  ;;  %v873_v29 = vsel %vm737_vm5, 1.0, %v1057_v8 }
 0x21d   :  { %v334_v32 = vmul.bf16 %v332_v30, %v326_v26 }
 0x21e   :  { %v333_v33 = vmul.bf16 %v331_v31, %v325_v27 }
 0x21f   :  { %v336_v34 = vadd.bf16 %v334_v32, %v326_v26 }
 0x220   :  { %v335_v35 = vadd.bf16 %v333_v33, %v325_v27 }
 0x221   :  { %v338_v36 = vmul.bf16 1061961548, %v336_v34  ;;  %v720_v34 = vadd.s32 64, %v1269_v59 }
 0x222   :  { %v337_v37 = vmul.bf16 1061961548, %v335_v35 }
 0x223   :  { %994 = vtanh.bf16 %v338_v36  ;;  %vm741_vm9 = vcmp.eq.s32.totalorder %v720_v34, %v1275_v62 }
 0x224   :  { %996 = vtanh.bf16 %v337_v37 }
 0x22e   :  { %v995_v38 = vpop.eup %994 }
 0x22f   :  { %v997_v39 = vpop.eup %996  ;;  %v342_v42 = vadd.bf16 1065369472, %v995_v38  ;;  %v874_v38 = vsel %vm738_vm6, 1.0, %v1057_v8 }
 0x230   :  { %v341_v41 = vadd.bf16 1065369472, %v997_v39  ;;  %v721_v39 = vadd.s32 72, %v1269_v59 }
 0x231   :  { %v344_v45 = vmul.bf16 %v342_v42, %v328_v44 }
 0x232   :  { %v343_v43 = vmul.bf16 %v341_v41, %v327_v40  ;;  %v430_v40 = vpop.permute.xlu0 %429  ;;  %vm742_vm10 = vcmp.eq.s32.totalorder %v721_v39, %v1275_v62 }
 0x234   :  { %937 = vmatprep.subr.bf16.mxu1 %v343_v43 }
 0x235   :  { %938 = vmatpush3.bf16.msra.mxu1 %v343_v43 }
 0x236   :  { %939 = vmatprep.subr.bf16.mxu1 %v344_v45  ;;  %v440_v61 = vpop.permute.xlu0 %439 }
 0x239   :  { %940 = vmatpush3.bf16.msra.mxu1 %v344_v45  ;;  %v875_v45 = vsel %vm739_vm7, 1.0, %v1057_v8 }
 0x23c   :  { %942 = vmatmul.mubr.msk.bf16.vlgmr.msra.gmra.mrb[4].mxu1 %vm132_vm0, %v983_v46 }
 0x23d   :  { %945 = vmatprep.mubr.msk.bf16.mxu1 %vm132_vm0, %v984_v47  ;;  %v722_v47 = vadd.s32 80, %v1269_v59 }
 0x23f   :  { %vm743_vm11 = vcmp.eq.s32.totalorder %v722_v47, %v1275_v62 }
 0x244   :  { %946 = vmatmul.mubr.msk.bf16.gmra.mrb[8].mxu1 %vm132_vm0, %v985_v48  ;;  %v723_v48 = vadd.s32 88, %v1269_v59 }
 0x245   :  { %949 = vmatprep.mubr.msk.bf16.mxu1 %vm132_vm0, %v986_v49  ;;  %v435_v49 = vpop.permute.xlu1 %434 }
 0x246   :  { %vm744_vm12 = vcmp.eq.s32.totalorder %v723_v48, %v1275_v62 }
 0x24c   :  { %950 = vmatmul.mubr.msk.bf16.gmra.mrb[12].mxu1 %vm132_vm0, %v987_v50 }
 0x24d   :  { %953 = vmatprep.mubr.msk.bf16.mxu1 %vm132_vm0, %v988_v51 }
 0x254   :  { %954 = vmatmul.mubr.msk.bf16.gmra.mrb[16].mxu1 %vm132_vm0, %v989_v52 }
 0x30f   :  { %v943_v1 = vpop.f32.mrb[4].mxu1 }
 0x310   :  { %v555_v3 = vpop.f32.mrb[5].mxu1  ;;  %v1288_v12 = vadd.f32 %v943_v1, %v390_v55 }
 0x311   :  { %v1283_v5 = vadd.f32 %v555_v3, %v380_v53  ;;  %v944_v6 = vpop.f32.mrb[6].mxu1  ;;  %v876_v53 = vsel %vm740_vm8, 1.0, %v1057_v8  ;;  %v724_v3 = vadd.s32 96, %v1269_v59 }
 0x312   :  { %v558_v10 = vpop.f32.mrb[7].mxu1  ;;  %v1298_v20 = vadd.f32 %v944_v6, %v395_v56  ;;  %v783_v24 = vmul.f32 %v871_v15, %v1288_v12 }
 0x313   :  { %v1291_v13 = vadd.f32 %v558_v10, %v385_v54  ;;  %v781_v19 = vmul.f32 %v869_v9, %v1283_v5  ;;  %v878_v9 = vsel %vm742_vm10, 1.0, %v1057_v8  ;;  %v725_v10 = vadd.s32 104, %v1269_v59 }
 0x314   :  { %v784_v30 = vmul.f32 %v872_v22, %v1298_v20  ;;  %vm745_vm13 = vcmp.eq.s32.totalorder %v724_v3, %v1275_v62 }
 0x315   :  { %v782_v21 = vmul.f32 %v870_v11, %v1291_v13  ;;  %v445_v11 = vpop.permute.xlu1 %444  ;;  %vm746_vm14 = vcmp.eq.s32.totalorder %v725_v10, %v1275_v62 }
 0x317   :  { %v797_v25 = vadd.f32 %v782_v21, %v781_v19  ;;  %v947_v26 = vpop.f32.mrb[8].mxu1  ;;  %v726_v21 = vadd.s32 112, %v1269_v59 }
 0x318   :  { %v1305_v27 = vadd.f32 %v947_v26, %v410_v0  ;;  %v571_v28 = vpop.f32.mrb[9].mxu1  ;;  %v727_v26 = vadd.s32 120, %v1269_v59 }
 0x319   :  { %v798_v31 = vadd.f32 %v797_v25, %v783_v24  ;;  %v1311_v32 = vadd.f32 %v571_v28, %v400_v58  ;;  %v948_v33 = vpop.f32.mrb[10].mxu1  ;;  %v450_v28 = vpop.permute.xlu0 %449  ;;  %vm747_vm15 = vcmp.eq.s32.totalorder %v726_v21, %v1275_v62 }
 0x31a   :  { %v620_v35 = vmax.f32 %v1288_v12, %v1305_v27  ;;  %v1316_v36 = vadd.f32 %v948_v33, %v415_v4  ;;  %v574_v37 = vpop.f32.mrb[11].mxu1  ;;  %v787_v54 = vmul.f32 %v875_v45, %v1305_v27  ;;  %vm748_vm0 = vcmp.eq.s32.totalorder %v727_v26, %v1275_v62 }
 0x31b   :  { %v618_v41 = vmax.f32 %v1283_v5, %v1311_v32  ;;  %v785_v42 = vmul.f32 %v873_v29, %v1311_v32  ;;  %v799_v43 = vadd.f32 %v798_v31, %v784_v30  ;;  %v1323_v44 = vadd.f32 %v574_v37, %v405_v60  ;;  %v455_v37 = vpop.permute.xlu1 %454 }
 0x31c   :  { %v621_v46 = vmax.f32 %v1298_v20, %v1316_v36  ;;  %v877_v60 = vsel %vm741_vm9, 1.0, %v1057_v8  ;;  %v788_v63 = vmul.f32 %v876_v53, %v1316_v36  ;;  %v882_v45 = vsel %vm746_vm14, 1.0, %v1057_v8 }
 0x31d   :  { %v800_v50 = vadd.f32 %v799_v43, %v785_v42  ;;  %v619_v51 = vmax.f32 %v1291_v13, %v1323_v44  ;;  %v786_v52 = vmul.f32 %v874_v38, %v1323_v44 }
 0x31f   :  { %v801_v55 = vadd.f32 %v800_v50, %v786_v52  ;;  %v951_v56 = vpop.f32.mrb[12].mxu1  ;;  %v883_v50 = vsel %vm747_vm15, 1.0, %v1057_v8 }
 0x320   :  { %v1341_v57 = vadd.f32 %v951_v56, %v430_v40  ;;  %v587_v58 = vpop.f32.mrb[13].mxu1 }
 0x321   :  { %v802_v0 = vadd.f32 %v801_v55, %v787_v54  ;;  %v1347_v1 = vadd.f32 %v587_v58, %v420_v18  ;;  %v952_v2 = vpop.f32.mrb[14].mxu1  ;;  %v879_v18 = vsel %vm743_vm11, 1.0, %v1057_v8  ;;  %v884_v55 = vsel %vm748_vm0, 1.0, %v1057_v8 }
 0x322   :  { %v624_v4 = vmax.f32 %v620_v35, %v1341_v57  ;;  %v1351_v6 = vadd.f32 %v952_v2, %v435_v49  ;;  %v590_v7 = vpop.f32.mrb[15].mxu1  ;;  %v791_v29 = vmul.f32 %v879_v18, %v1341_v57  ;;  %v881_v35 = vsel %vm745_vm13, 1.0, %v1057_v8 }
 0x323   :  { %v622_v14 = vmax.f32 %v618_v41, %v1347_v1  ;;  %v789_v15 = vmul.f32 %v877_v60, %v1347_v1  ;;  %v803_v16 = vadd.f32 %v802_v0, %v788_v63  ;;  %v1357_v17 = vadd.f32 %v590_v7, %v425_v23 }
 0x324   :  { %v625_v19 = vmax.f32 %v621_v46, %v1351_v6  ;;  %v880_v23 = vsel %vm744_vm12, 1.0, %v1057_v8 }
 0x325   :  { %v804_v22 = vadd.f32 %v803_v16, %v789_v15  ;;  %v623_v24 = vmax.f32 %v619_v51, %v1357_v17  ;;  %v790_v25 = vmul.f32 %v878_v9, %v1357_v17  ;;  %v792_v38 = vmul.f32 %v880_v23, %v1351_v6 }
 0x327   :  { %v805_v30 = vadd.f32 %v804_v22, %v790_v25  ;;  %v955_v31 = vpop.f32.mrb[16].mxu1 }
 0x328   :  { %v1373_v33 = vadd.f32 %v955_v31, %v450_v28  ;;  %v603_v34 = vpop.f32.mrb[17].mxu1 }
 0x329   :  { %v806_v39 = vadd.f32 %v805_v30, %v791_v29  ;;  %v1378_v40 = vadd.f32 %v603_v34, %v440_v61  ;;  %v956_v59 = vpop.f32.mrb[18].mxu1 }
 0x32a   :  { %v628_v41 = vmax.f32 %v624_v4, %v1373_v33  ;;  %v1381_v42 = vadd.f32 %v956_v59, %v455_v37  ;;  %v606_v43 = vpop.f32.mrb[19].mxu1  ;;  %v795_v56 = vmul.f32 %v883_v50, %v1373_v33 }
 0x32b   :  { %v626_v46 = vmax.f32 %v622_v14, %v1378_v40  ;;  %v793_v47 = vmul.f32 %v881_v35, %v1378_v40  ;;  %v807_v48 = vadd.f32 %v806_v39, %v792_v38  ;;  %v1387_v49 = vadd.f32 %v606_v43, %v445_v11 }
 0x32c   :  { %v629_v51 = vmax.f32 %v625_v19, %v1381_v42  ;;  %v796_v61 = vmul.f32 %v884_v55, %v1381_v42 }
 0x32d   :  { %v808_v52 = vadd.f32 %v807_v48, %v793_v47  ;;  %v627_v53 = vmax.f32 %v623_v24, %v1387_v49  ;;  %v794_v54 = vmul.f32 %v882_v45, %v1387_v49 }
 0x32e   :  { %v631_v62 = vmax.f32 %v628_v41, %v629_v51 }
 0x32f   :  { %v630_v58 = vmax.f32 %v626_v46, %v627_v53  ;;  %v809_v60 = vadd.f32 %v808_v52, %v794_v54 }
 0x331   :  { %v632_v63 = vmax.f32 %v630_v58, %v631_v62  ;;  %v810_v0 = vadd.f32 %v809_v60, %v795_v56 }
 0x333   :  { %v633_v2 = vrot.slane %v632_v63, 4  ;;  %v1396_v3 = vadd.f32 %v810_v0, %v796_v61 }
 0x335   :  { %v634_v4 = vmax.f32 %v632_v63, %v633_v2 }
 0x337   :  { %v635_v7 = vrot.slane %v634_v4, 2 }
 0x339   :  { %v636_v9 = vmax.f32 %v634_v4, %v635_v7 }
 0x33b   :  { %v637_v10 = vrot.slane %v636_v9, 1 }
 0x33d   :  { %v1398_v11 = vmax.f32 %v636_v9, %v637_v10 }
 0x33f   :  { %v639_v8 = vsub.f32 %v1283_v5, %v1398_v11  ;;  %v640_v14 = vsub.f32 %v1291_v13, %v1398_v11  ;;  %v641_v15 = vsub.f32 %v1288_v12, %v1398_v11  ;;  %v642_v16 = vsub.f32 %v1298_v20, %v1398_v11 }
 0x340   :  { %v643_v19 = vsub.f32 %v1311_v32, %v1398_v11  ;;  %v644_v24 = vsub.f32 %v1323_v44, %v1398_v11  ;;  %v645_v13 = vsub.f32 %v1305_v27, %v1398_v11  ;;  %v646_v20 = vsub.f32 %v1316_v36, %v1398_v11 }
 0x341   :  { %v655_v18 = vmul.f32 1.442695, %v639_v8  ;;  %v657_v21 = vmul.f32 1.442695, %v640_v14  ;;  %v659_v22 = vmul.f32 1.442695, %v641_v15  ;;  %v647_v32 = vsub.f32 %v1347_v1, %v1398_v11 }
 0x342   :  { %v661_v5 = vmul.f32 1.442695, %v642_v16  ;;  %v663_v12 = vmul.f32 1.442695, %v643_v19  ;;  %v665_v25 = vmul.f32 1.442695, %v644_v24  ;;  %v648_v44 = vsub.f32 %v1357_v17, %v1398_v11 }
 0x343   :  { %998 = vpow2.f32 %v655_v18  ;;  %v667_v23 = vmul.f32 1.442695, %v645_v13  ;;  %v669_v26 = vmul.f32 1.442695, %v646_v20  ;;  %v649_v27 = vsub.f32 %v1341_v57, %v1398_v11 }
 0x344   :  { %1000 = vpow2.f32 %v657_v21  ;;  %v671_v30 = vmul.f32 1.442695, %v647_v32  ;;  %v650_v34 = vsub.f32 %v1351_v6, %v1398_v11  ;;  %v673_v1 = vmul.f32 1.442695, %v648_v44  ;;  %v819_v44 = vld [vmem:[%s1452_s2] sm:$0x1] }
 0x345   :  { %1002 = vpow2.f32 %v659_v22  ;;  %v651_v17 = vsub.f32 %v1378_v40, %v1398_v11  ;;  %v675_v38 = vmul.f32 1.442695, %v649_v27  ;;  %v652_v57 = vsub.f32 %v1387_v49, %v1398_v11 }
 0x346   :  { %1004 = vpow2.f32 %v661_v5  ;;  %v677_v41 = vmul.f32 1.442695, %v650_v34  ;;  %v653_v6 = vsub.f32 %v1373_v33, %v1398_v11  ;;  %v654_v50 = vsub.f32 %v1381_v42, %v1398_v11 }
 0x347   :  { %1006 = vpow2.f32 %v663_v12  ;;  %v679_v46 = vmul.f32 1.442695, %v651_v17  ;;  %v681_v40 = vmul.f32 1.442695, %v652_v57  ;;  %v812_v18 = vrot.slane %v1396_v3, 4 }
 0x348   :  { %1008 = vpow2.f32 %v665_v25  ;;  %v683_v49 = vmul.f32 1.442695, %v653_v6  ;;  %v685_v62 = vmul.f32 1.442695, %v654_v50 }
 0x349   :  { %1010 = vpow2.f32 %v667_v23  ;;  %v813_v22 = vadd.f32 %v812_v18, %v1396_v3 }
 0x34a   :  { %1012 = vpow2.f32 %v669_v26 }
 0x34b   :  { %1014 = vpow2.f32 %v671_v30  ;;  %v814_v5 = vrot.slane %v813_v22, 2 }
 0x34c   :  { %1016 = vpow2.f32 %v673_v1 }
 0x34d   :  { %v999_v28 = vpop.eup %998  ;;  %1018 = vpow2.f32 %v675_v38  ;;  %v815_v13 = vadd.f32 %v814_v5, %v813_v22 }
 0x34e   :  { %v1001_v29 = vpop.eup %1000  ;;  %1020 = vpow2.f32 %v677_v41 }
 0x34f   :  { %v687_v36 = vadd.f32 %v1001_v29, %v999_v28  ;;  %v1003_v31 = vpop.eup %1002  ;;  %1022 = vpow2.f32 %v679_v46  ;;  %v816_v12 = vrot.slane %v815_v13, 1 }
 0x350   :  { %v1005_v37 = vpop.eup %1004  ;;  %1024 = vpow2.f32 %v681_v40 }
 0x351   :  { %v688_v35 = vadd.f32 %v1003_v31, %v687_v36  ;;  %v1007_v59 = vpop.eup %1006  ;;  %1026 = vpow2.f32 %v683_v49  ;;  %v817_v23 = vadd.f32 %v816_v12, %v815_v13 }
 0x352   :  { %v1009_v45 = vpop.eup %1008  ;;  %1028 = vpow2.f32 %v685_v62 }
 0x353   :  { %v689_v39 = vadd.f32 %v1005_v37, %v688_v35  ;;  %v1011_v48 = vpop.eup %1010 }
 0x354   :  { %v1013_v52 = vpop.eup %1012 }
 0x355   :  { %v690_v43 = vadd.f32 %v1007_v59, %v689_v39  ;;  %v1015_v54 = vpop.eup %1014 }
 0x356   :  { %v1017_v56 = vpop.eup %1016 }
 0x357   :  { %v691_v47 = vadd.f32 %v1009_v45, %v690_v43  ;;  %v1019_v58 = vpop.eup %1018 }
 0x358   :  { %v1021_v61 = vpop.eup %1020 }
 0x359   :  { %v692_v51 = vadd.f32 %v1011_v48, %v691_v47  ;;  %v1023_v0 = vpop.eup %1022 }
 0x35a   :  { %v1025_v42 = vpop.eup %1024 }
 0x35b   :  { %v693_v53 = vadd.f32 %v1013_v52, %v692_v51  ;;  %v1027_v7 = vpop.eup %1026 }
 0x35c   :  { %v1029_v10 = vpop.eup %1028 }
 0x35d   :  { %v694_v55 = vadd.f32 %v1015_v54, %v693_v53 }
 0x35f   :  { %v695_v33 = vadd.f32 %v1017_v56, %v694_v55 }
 0x361   :  { %v696_v60 = vadd.f32 %v1019_v58, %v695_v33 }
 0x363   :  { %v697_v63 = vadd.f32 %v1021_v61, %v696_v60 }
 0x365   :  { %v698_v2 = vadd.f32 %v1023_v0, %v697_v63 }
 0x367   :  { %v699_v4 = vadd.f32 %v1025_v42, %v698_v2 }
 0x369   :  { %v700_v9 = vadd.f32 %v1027_v7, %v699_v4 }
 0x36b   :  { %v701_v8 = vadd.f32 %v1029_v10, %v700_v9 }
 0x36d   :  { %v702_v14 = vrot.slane %v701_v8, 4 }
 0x36f   :  { %v703_v15 = vadd.f32 %v702_v14, %v701_v8 }
 0x371   :  { %v704_v16 = vrot.slane %v703_v15, 2 }
 0x373   :  { %v705_v19 = vadd.f32 %v704_v16, %v703_v15 }
 0x375   :  { %v706_v21 = vrot.slane %v705_v19, 1 }
 0x377   :  { %v707_v24 = vadd.f32 %v706_v21, %v705_v19 }
 0x379   :  { %1030 = vlog2.f32 %v707_v24 }
 0x383   :  { %v1031_v20 = vpop.eup %1030 }
 0x384   :  { %v709_v25 = vmul.f32 0.6931472, %v1031_v20 }
 0x386   :  { %v710_v32 = vadd.f32 %v709_v25, %v1398_v11 }
 0x388   :  { %v818_v26 = vsub.f32 %v710_v32, %v817_v23 }
 0x38a   :  { %v820_v28 = vmul.f32 %v819_v44, %v818_v26 }
 0x38c   :  { %821 = vst [vmem:[#allocation2] sm:$0x1] %v820_v28 }
 0x38d   :  { %1043 = shalt.err (!%p1040_p4)
}
 0x38e   :  { %s1044_s10 = scalar_lea.hbm %s1459_s9, 16 }
 0x38f   :  { %p1045_p5 = scmp.ne.s32.totalorder %s1459_s9, %s1044_s10  ;;  %p1048_p6 = scmp.lt.u32.totalorder %s1044_s10, %s1459_s9 }
 0x391   :  { %p1050_p7 = pnand %p1048_p6, %p1045_p5 }
 0x393   :  { %1053 = shalt.err (!%p1050_p7)
}
 0x394   :  { %831 = dma.vmem_to_hbm [thread:$0]  %s829_s27, 16, %s1459_s9, [#allocation3]  }
 0x395   :  { %1054 = dma.done.wait [#allocation3], 16  }
 0x396   :  { %1055 = vsyncadd [#allocation3], 4294967280 }
 0x397   :  { %835 = vsyncpa [#allocation3], 1 }

// kernel: tpu_custom_call.1
= control target key start
LH: loop header
LB: loop body
LE: loop exit
PB: predicated region body
PF: predicated region fallthrough
CT: control target
= control target key end

     0   :  { %vm132_vm0 = vcmask 261120   ;;  %v1056_v3 = vmov 0   ;;  %s1450_s0 = inlined_call_operand.vmem [shape: bf16[128,32], index: 0, kind: input, shape index: {}]   ;;  %s1451_s1 = inlined_call_operand.vmem [shape: s32[1,128], index: 1, kind: input, shape index: {}]   ;;  %s1452_s2 = inlined_call_operand.vmem [shape: f32[1,128], index: 2, kind: input, shape index: {}]   ;;  %s1453_s3 = inlined_call_operand.vmem [shape: bf16[32,32], index: 3, kind: input, shape index: {}]   ;;  %s1454_s4 = inlined_call_operand.vmem [shape: f32[32,1], index: 4, kind: input, shape index: {}]   ;;  %s1455_s5 = inlined_call_operand.vmem [shape: bf16[32,32], index: 5, kind: input, shape index: {}]   ;;  %s1456_s6 = inlined_call_operand.vmem [shape: f32[32,1], index: 6, kind: input, shape index: {}]   ;;  %s1457_s7 = inlined_call_operand.vmem [shape: bf16[128,32], index: 7, kind: input, shape index: {}]   ;;  %s1458_s8 = inlined_call_operand.vmem [shape: f32[128,1], index: 8, kind: input, shape index: {}]   ;;  %s1459_s9 = inlined_call_operand.hbm [shape: f32[1,128], index: 9, kind: output, shape index: {}]  }
   0x1   :  { %v970_v0 = vld [vmem:[%s1450_s0] sm:$0xff]   ;;  %v971_v1 = vld [vmem:[%s1450_s0 + $0x8] sm:$0xff]   ;;  %968 = vset.pattern.permute.xlu0 %v1056_v3  ;;  %969 = vset.pattern.permute.xlu1 %v1056_v3  ;;  %v972_v4 = vld [vmem:[%s1450_s0 + $0x10] sm:$0xff]  }
   0x2   :  { %957 = vmatprep.subr.msk.bf16.mxu0 %vm132_vm0, %v970_v0  ;;  %v140_v2 = vsel %vm132_vm0, %v970_v0, 0  ;;  %v143_v5 = vsel %vm132_vm0, %v971_v1, 0  ;;  %v978_v6 = vld [vmem:[%s1453_s3] sm:$0xff]   ;;  %v60_v8 = vld [vmem:[%s1454_s4 + $0x10] sm:$0xff]  ;;  %v59_v9 = vld [vmem:[%s1454_s4 + $0x8] sm:$0xff]  ;;  %v146_v12 = vsel %vm132_vm0, %v972_v4, 0 }
   0x3   :  { %910 = vmatpush3.bf16.xpose.msra.mxu0 %v140_v2  ;;  %925 = vmatprep.mubr.msk.bf16.mxu0 %vm132_vm0, %v978_v6  ;;  %v58_v7 = vld [vmem:[%s1454_s4] sm:$0xff]  ;;  %v973_v10 = vld [vmem:[%s1450_s0 + $0x18] sm:$0xff]   ;;  %v237_v15 = vld [vmem:[%s1456_s6 + $0x8] sm:$0xff] }
   0x4   :  { %958 = vmatprep.subr.msk.bf16.mxu0 %vm132_vm0, %v971_v1  ;;  %64 = vperm.xlu0 %968, %v58_v7   ;;  %v61_v11 = vld [vmem:[%s1454_s4 + $0x18] sm:$0xff]  ;;  %v236_v13 = vld [vmem:[%s1456_s6] sm:$0xff]  ;;  %v149_v14 = vsel %vm132_vm0, %v973_v10, 0  ;;  %v238_v16 = vld [vmem:[%s1456_s6 + $0x10] sm:$0xff] }
   0x5   :  { %74 = vperm.xlu1 %969, %v60_v8   ;;  %v239_v17 = vld [vmem:[%s1456_s6 + $0x18] sm:$0xff]  ;;  %v974_v18 = vld [vmem:[%s1450_s0 + $0x20] sm:$0xff]  }
   0x6   :  { %v361_v19 = vld [vmem:[%s1458_s8] sm:$0xff] }
   0x8   :  { %69 = vperm.xlu0 %968, %v59_v9  }
   0x9   :  { %79 = vperm.xlu1 %969, %v61_v11  }
   0xb   :  { %912 = vmatpush3.bf16.xpose.msra.mxu0 %v143_v5 }
   0xc   :  { %959 = vmatprep.subr.msk.bf16.mxu0 %vm132_vm0, %v972_v4  ;;  %242 = vperm.xlu0 %968, %v236_v13  }
   0xd   :  { %247 = vperm.xlu1 %969, %v237_v15  }
  0x10   :  { %252 = vperm.xlu0 %968, %v238_v16  }
  0x11   :  { %257 = vperm.xlu1 %969, %v239_v17  }
  0x13   :  { %914 = vmatpush3.bf16.xpose.msra.mxu0 %v146_v12 }
  0x14   :  { %960 = vmatprep.subr.msk.bf16.mxu0 %vm132_vm0, %v973_v10 }
  0x15   :  { %14 = vsyncpa [#allocation3], 0  ;;  %v362_v20 = vld [vmem:[%s1458_s8 + $0x8] sm:$0xff]  ;;  %379 = vperm.xlu0 %968, %v361_v19   ;;  %v363_v21 = vld [vmem:[%s1458_s8 + $0x10] sm:$0xff]  ;;  %v152_v23 = vsel %vm132_vm0, %v974_v18, 0  ;;  %s1058_s26 = smov [#allocation2]  }
  0x16   :  { %384 = vperm.xlu1 %969, %v362_v20   ;;  %v364_v22 = vld [vmem:[%s1458_s8 + $0x18] sm:$0xff]  ;;  %v975_v24 = vld [vmem:[%s1450_s0 + $0x28] sm:$0xff]   ;;  %v365_v25 = vld [vmem:[%s1458_s8 + $0x20] sm:$0xff]  ;;  %s828_s27 = sshll.u32 %s1058_s26, 4  ;;  %s829_s27 = int_to_ptr.vmem [resolvable:$true] %s828_s27 }
  0x17   :  { %v366_v26 = vld [vmem:[%s1458_s8 + $0x28] sm:$0xff]  ;;  %v367_v27 = vld [vmem:[%s1458_s8 + $0x30] sm:$0xff]  ;;  %v368_v28 = vld [vmem:[%s1458_s8 + $0x38] sm:$0xff]  ;;  %v155_v29 = vsel %vm132_vm0, %v975_v24, 0  ;;  %s1036_s28 = scalar_lea.vmem %s829_s27, 32  ;;  %p1037_p1 = scmp.lt.s32.totalorder %s829_s27, %s829_s27 }
  0x18   :  { %v976_v30 = vld [vmem:[%s1450_s0 + $0x30] sm:$0xff]   ;;  %v369_v31 = vld [vmem:[%s1458_s8 + $0x40] sm:$0xff]  ;;  %v370_v32 = vld [vmem:[%s1458_s8 + $0x48] sm:$0xff] }
  0x19   :  { %389 = vperm.xlu0 %968, %v363_v21   ;;  %v371_v33 = vld [vmem:[%s1458_s8 + $0x50] sm:$0xff]  ;;  %v372_v34 = vld [vmem:[%s1458_s8 + $0x58] sm:$0xff]  ;;  %v158_v35 = vsel %vm132_vm0, %v976_v30, 0  ;;  %v373_v37 = vld [vmem:[%s1458_s8 + $0x60] sm:$0xff] }
  0x1a   :  { %394 = vperm.xlu1 %969, %v364_v22   ;;  %v977_v36 = vld [vmem:[%s1450_s0 + $0x38] sm:$0xff]   ;;  %v374_v38 = vld [vmem:[%s1458_s8 + $0x68] sm:$0xff]  ;;  %v375_v39 = vld [vmem:[%s1458_s8 + $0x70] sm:$0xff]  ;;  %s1032_s0 = scalar_lea.vmem %s829_s27, 16 }
  0x1b   :  { %916 = vmatpush3.bf16.xpose.msra.mxu0 %v149_v14  ;;  %v376_v40 = vld [vmem:[%s1458_s8 + $0x78] sm:$0xff]  ;;  %v161_v41 = vsel %vm132_vm0, %v977_v36, 0  ;;  %v979_v42 = vld [vmem:[%s1453_s3 + $0x8] sm:$0xff]   ;;  %v980_v43 = vld [vmem:[%s1455_s5] sm:$0xff]   ;;  %p1033_p0 = scmp.ne.s32.totalorder %s829_s27, %s1032_s0  ;;  %p1038_p2 = scmp.lt.s32.totalorder %s1036_s28, %s1032_s0 }
  0x1c   :  { %961 = vmatprep.subr.msk.bf16.mxu0 %vm132_vm0, %v974_v18  ;;  %933 = vmatprep.mubr.msk.bf16.mxu1 %vm132_vm0, %v980_v43  ;;  %v981_v12 = vld [vmem:[%s1455_s5 + $0x8] sm:$0xff]   ;;  %v982_v13 = vld [vmem:[%s1457_s7] sm:$0xff]  }
  0x1d   :  { %399 = vperm.xlu0 %968, %v365_v25   ;;  %p1039_p3 = por %p1038_p2, %p1037_p1 }
  0x1e   :  { %404 = vperm.xlu1 %969, %v366_v26  }
  0x1f   :  { %p1040_p4 = pnand %p1039_p3, %p1033_p0 }
  0x21   :  { %409 = vperm.xlu0 %968, %v367_v27  }
  0x22   :  { %414 = vperm.xlu1 %969, %v368_v28  }
  0x23   :  { %918 = vmatpush3.bf16.xpose.msra.mxu0 %v152_v23 }
  0x24   :  { %962 = vmatprep.subr.msk.bf16.mxu0 %vm132_vm0, %v975_v24 }
  0x25   :  { %419 = vperm.xlu0 %968, %v369_v31  }
  0x26   :  { %424 = vperm.xlu1 %969, %v370_v32  }
  0x29   :  { %429 = vperm.xlu0 %968, %v371_v33  }
  0x2a   :  { %434 = vperm.xlu1 %969, %v372_v34  }
  0x2b   :  { %920 = vmatpush3.bf16.xpose.msra.mxu0 %v155_v29 }
  0x2c   :  { %963 = vmatprep.subr.msk.bf16.mxu0 %vm132_vm0, %v976_v30 }
  0x2d   :  { %439 = vperm.xlu0 %968, %v373_v37  }
  0x2e   :  { %444 = vperm.xlu1 %969, %v374_v38  }
  0x31   :  { %449 = vperm.xlu0 %968, %v375_v39  }
  0x32   :  { %454 = vperm.xlu1 %969, %v376_v40  }
  0x33   :  { %922 = vmatpush3.bf16.xpose.msra.mxu0 %v158_v35 }
  0x34   :  { %964 = vmatprep.subr.msk.bf16.mxu0 %vm132_vm0, %v977_v36 }
  0x3b   :  { %924 = vmatpush3.bf16.xpose.msra.mxu0 %v161_v41 }
  0x42   :  { %926 = vmatmul.mubr.msk.bf16.vlgmr.msra.gmra.mrb[0].mxu0 %vm132_vm0, %v979_v42 }
  0x83   :  { %v65_v45 = vpop.permute.xlu0 %64 }
  0x84   :  { %v75_v44 = vpop.permute.xlu1 %74 }
  0x87   :  { %v70_v50 = vpop.permute.xlu0 %69 }
  0x88   :  { %v80_v48 = vpop.permute.xlu1 %79 }
  0x8b   :  { %v243_v14 = vpop.permute.xlu0 %242 }
  0x8c   :  { %v248_v15 = vpop.permute.xlu1 %247 }
  0x8f   :  { %v253_v17 = vpop.permute.xlu0 %252 }
  0x90   :  { %v258_v19 = vpop.permute.xlu1 %257 }
 0x115   :  { %v927_v46 = vpop.f32.mrb[0].mxu0 }
 0x116   :  { %v197_v47 = vpop.f32.mrb[1].mxu0  ;;  %v206_v51 = vadd.f32 %v927_v46, %v75_v44  ;;  %v983_v46 = vld [vmem:[%s1457_s7 + $0x8] sm:$0xff]  }
 0x117   :  { %v928_v49 = vpop.f32.mrb[2].mxu0  ;;  %v198_v54 = vadd.f32 %v197_v47, %v65_v45  ;;  %v984_v47 = vld [vmem:[%s1457_s7 + $0x10] sm:$0xff]  }
 0x118   :  { %v209_v52 = vadd.f32 %v928_v49, %v80_v48  ;;  %v200_v53 = vpop.f32.mrb[3].mxu0  ;;  %v985_v48 = vld [vmem:[%s1457_s7 + $0x18] sm:$0xff]   ;;  %v986_v49 = vld [vmem:[%s1457_s7 + $0x20] sm:$0xff]  }
 0x119   :  { %v201_v55 = vadd.f32 %v200_v53, %v70_v50  ;;  %v987_v50 = vld [vmem:[%s1457_s7 + $0x28] sm:$0xff]   ;;  %v380_v53 = vpop.permute.xlu0 %379 }
 0x11a   :  { %v213_v56 = vpack.c.bf16 %v209_v52, %v206_v51  ;;  %v988_v51 = vld [vmem:[%s1457_s7 + $0x30] sm:$0xff]   ;;  %v989_v52 = vld [vmem:[%s1457_s7 + $0x38] sm:$0xff]  }
 0x11b   :  { %v212_v57 = vpack.c.bf16 %v201_v55, %v198_v54  ;;  %v385_v54 = vpop.permute.xlu1 %384 }
 0x11c   :  { %v217_v58 = vmul.bf16 1027030327, %v213_v56  ;;  %v215_v10 = vmul.bf16 1056980736, %v213_v56 }
 0x11d   :  { %v216_v59 = vmul.bf16 1027030327, %v212_v57  ;;  %v214_v6 = vmul.bf16 1056980736, %v212_v57  ;;  %v390_v55 = vpop.permute.xlu0 %389 }
 0x11e   :  { %v219_v60 = vmul.bf16 %v217_v58, %v213_v56 }
 0x11f   :  { %v218_v61 = vmul.bf16 %v216_v59, %v212_v57 }
 0x120   :  { %v221_v62 = vmul.bf16 %v219_v60, %v213_v56 }
 0x121   :  { %v220_v63 = vmul.bf16 %v218_v61, %v212_v57  ;;  %v400_v58 = vpop.permute.xlu0 %399 }
 0x122   :  { %v223_v0 = vadd.bf16 %v221_v62, %v213_v56  ;;  %v395_v56 = vpop.permute.xlu1 %394  ;;  %v1275_v62 = vld [vmem:[%s1451_s1] ss:$0 sm:$0xff] }
 0x123   :  { %v222_v1 = vadd.bf16 %v220_v63, %v212_v57  ;;  %v711_v57 = vlaneseq }
 0x124   :  { %v225_v2 = vmul.bf16 1061961548, %v223_v0 }
 0x125   :  { %v224_v3 = vmul.bf16 1061961548, %v222_v1  ;;  %v1269_v59 = vshrl.u32 %v711_v57, 7  ;;  %v410_v0 = vpop.permute.xlu0 %409 }
 0x126   :  { %990 = vtanh.bf16 %v225_v2  ;;  %v405_v60 = vpop.permute.xlu1 %404 }
 0x127   :  { %992 = vtanh.bf16 %v224_v3  ;;  %v713_v61 = vadd.s32 8, %v1269_v59  ;;  %v714_v63 = vadd.s32 16, %v1269_v59  ;;  %vm733_vm1 = vcmp.eq.s32.totalorder %v1269_v59, %v1275_v62 }
 0x128   :  { %v715_v2 = vadd.s32 24, %v1269_v59 }
 0x129   :  { %vm734_vm2 = vcmp.eq.s32.totalorder %v713_v61, %v1275_v62  ;;  %vm735_vm3 = vcmp.eq.s32.totalorder %v714_v63, %v1275_v62 }
 0x12a   :  { %vm736_vm4 = vcmp.eq.s32.totalorder %v715_v2, %v1275_v62 }
 0x131   :  { %v991_v4 = vpop.eup %990 }
 0x132   :  { %v993_v5 = vpop.eup %992  ;;  %v229_v8 = vadd.bf16 1065369472, %v991_v4  ;;  %v415_v4 = vpop.permute.xlu1 %414 }
 0x133   :  { %v228_v7 = vadd.bf16 1065369472, %v993_v5 }
 0x134   :  { %v231_v11 = vmul.bf16 %v229_v8, %v215_v10  ;;  %v1057_v8 = vmov 0.0  }
 0x135   :  { %v230_v9 = vmul.bf16 %v228_v7, %v214_v6  ;;  %v716_v7 = vadd.s32 32, %v1269_v59 }
 0x137   :  { %929 = vmatprep.subr.bf16.mxu1 %v230_v9  ;;  %vm737_vm5 = vcmp.eq.s32.totalorder %v716_v7, %v1275_v62 }
 0x138   :  { %930 = vmatpush3.bf16.msra.mxu1 %v230_v9  ;;  %v869_v9 = vsel %vm733_vm1, 1.0, %v1057_v8 }
 0x139   :  { %931 = vmatprep.subr.bf16.mxu1 %v231_v11 }
 0x13c   :  { %932 = vmatpush3.bf16.msra.mxu1 %v231_v11  ;;  %v870_v11 = vsel %vm734_vm2, 1.0, %v1057_v8 }
 0x13f   :  { %934 = vmatmul.mubr.msk.bf16.vlgmr.msra.gmra.mrb[0].mxu1 %vm132_vm0, %v981_v12 }
 0x140   :  { %941 = vmatprep.mubr.msk.bf16.mxu1 %vm132_vm0, %v982_v13 }
 0x212   :  { %v935_v16 = vpop.f32.mrb[0].mxu1 }
 0x213   :  { %v310_v18 = vpop.f32.mrb[1].mxu1  ;;  %v319_v21 = vadd.f32 %v935_v16, %v253_v17  ;;  %v718_v16 = vadd.s32 48, %v1269_v59  ;;  %v719_v17 = vadd.s32 56, %v1269_v59 }
 0x214   :  { %v936_v20 = vpop.f32.mrb[2].mxu1  ;;  %v311_v24 = vadd.f32 %v310_v18, %v243_v14  ;;  %v717_v14 = vadd.s32 40, %v1269_v59  ;;  %v420_v18 = vpop.permute.xlu0 %419 }
 0x215   :  { %v322_v22 = vadd.f32 %v936_v20, %v258_v19  ;;  %v313_v23 = vpop.f32.mrb[3].mxu1  ;;  %vm739_vm7 = vcmp.eq.s32.totalorder %v718_v16, %v1275_v62  ;;  %vm740_vm8 = vcmp.eq.s32.totalorder %v719_v17, %v1275_v62 }
 0x216   :  { %v314_v25 = vadd.f32 %v313_v23, %v248_v15  ;;  %v871_v15 = vsel %vm735_vm3, 1.0, %v1057_v8  ;;  %v425_v23 = vpop.permute.xlu1 %424  ;;  %vm738_vm6 = vcmp.eq.s32.totalorder %v717_v14, %v1275_v62 }
 0x217   :  { %v326_v26 = vpack.c.bf16 %v322_v22, %v319_v21  ;;  %v872_v22 = vsel %vm736_vm4, 1.0, %v1057_v8 }
 0x218   :  { %v325_v27 = vpack.c.bf16 %v314_v25, %v311_v24 }
 0x219   :  { %v330_v28 = vmul.bf16 1027030327, %v326_v26  ;;  %v328_v44 = vmul.bf16 1056980736, %v326_v26 }
 0x21a   :  { %v329_v29 = vmul.bf16 1027030327, %v325_v27  ;;  %v327_v40 = vmul.bf16 1056980736, %v325_v27 }
 0x21b   :  { %v332_v30 = vmul.bf16 %v330_v28, %v326_v26 }
 0x21c   :  { %v331_v31 = vmul.bf16 %v329_v29, %v325_v27  ;;  %v873_v29 = vsel %vm737_vm5, 1.0, %v1057_v8 }
 0x21d   :  { %v334_v32 = vmul.bf16 %v332_v30, %v326_v26 }
 0x21e   :  { %v333_v33 = vmul.bf16 %v331_v31, %v325_v27 }
 0x21f   :  { %v336_v34 = vadd.bf16 %v334_v32, %v326_v26 }
 0x220   :  { %v335_v35 = vadd.bf16 %v333_v33, %v325_v27 }
 0x221   :  { %v338_v36 = vmul.bf16 1061961548, %v336_v34  ;;  %v720_v34 = vadd.s32 64, %v1269_v59 }
 0x222   :  { %v337_v37 = vmul.bf16 1061961548, %v335_v35 }
 0x223   :  { %994 = vtanh.bf16 %v338_v36  ;;  %vm741_vm9 = vcmp.eq.s32.totalorder %v720_v34, %v1275_v62 }
 0x224   :  { %996 = vtanh.bf16 %v337_v37 }
 0x22e   :  { %v995_v38 = vpop.eup %994 }
 0x22f   :  { %v997_v39 = vpop.eup %996  ;;  %v342_v42 = vadd.bf16 1065369472, %v995_v38  ;;  %v874_v38 = vsel %vm738_vm6, 1.0, %v1057_v8 }
 0x230   :  { %v341_v41 = vadd.bf16 1065369472, %v997_v39  ;;  %v721_v39 = vadd.s32 72, %v1269_v59 }
 0x231   :  { %v344_v45 = vmul.bf16 %v342_v42, %v328_v44 }
 0x232   :  { %v343_v43 = vmul.bf16 %v341_v41, %v327_v40  ;;  %v430_v40 = vpop.permute.xlu0 %429  ;;  %vm742_vm10 = vcmp.eq.s32.totalorder %v721_v39, %v1275_v62 }
 0x234   :  { %937 = vmatprep.subr.bf16.mxu1 %v343_v43 }
 0x235   :  { %938 = vmatpush3.bf16.msra.mxu1 %v343_v43 }
 0x236   :  { %939 = vmatprep.subr.bf16.mxu1 %v344_v45  ;;  %v440_v61 = vpop.permute.xlu0 %439 }
 0x239   :  { %940 = vmatpush3.bf16.msra.mxu1 %v344_v45  ;;  %v875_v45 = vsel %vm739_vm7, 1.0, %v1057_v8 }
 0x23c   :  { %942 = vmatmul.mubr.msk.bf16.vlgmr.msra.gmra.mrb[4].mxu1 %vm132_vm0, %v983_v46 }
 0x23d   :  { %945 = vmatprep.mubr.msk.bf16.mxu1 %vm132_vm0, %v984_v47  ;;  %v722_v47 = vadd.s32 80, %v1269_v59 }
 0x23f   :  { %vm743_vm11 = vcmp.eq.s32.totalorder %v722_v47, %v1275_v62 }
 0x244   :  { %946 = vmatmul.mubr.msk.bf16.gmra.mrb[8].mxu1 %vm132_vm0, %v985_v48  ;;  %v723_v48 = vadd.s32 88, %v1269_v59 }
 0x245   :  { %949 = vmatprep.mubr.msk.bf16.mxu1 %vm132_vm0, %v986_v49  ;;  %v435_v49 = vpop.permute.xlu1 %434 }
 0x246   :  { %vm744_vm12 = vcmp.eq.s32.totalorder %v723_v48, %v1275_v62 }
 0x24c   :  { %950 = vmatmul.mubr.msk.bf16.gmra.mrb[12].mxu1 %vm132_vm0, %v987_v50 }
 0x24d   :  { %953 = vmatprep.mubr.msk.bf16.mxu1 %vm132_vm0, %v988_v51 }
 0x254   :  { %954 = vmatmul.mubr.msk.bf16.gmra.mrb[16].mxu1 %vm132_vm0, %v989_v52 }
 0x30f   :  { %v943_v1 = vpop.f32.mrb[4].mxu1 }
 0x310   :  { %v555_v3 = vpop.f32.mrb[5].mxu1  ;;  %v1288_v12 = vadd.f32 %v943_v1, %v390_v55 }
 0x311   :  { %v1283_v5 = vadd.f32 %v555_v3, %v380_v53  ;;  %v944_v6 = vpop.f32.mrb[6].mxu1  ;;  %v876_v53 = vsel %vm740_vm8, 1.0, %v1057_v8  ;;  %v724_v3 = vadd.s32 96, %v1269_v59 }
 0x312   :  { %v558_v10 = vpop.f32.mrb[7].mxu1  ;;  %v1298_v20 = vadd.f32 %v944_v6, %v395_v56  ;;  %v783_v24 = vmul.f32 %v871_v15, %v1288_v12 }
 0x313   :  { %v1291_v13 = vadd.f32 %v558_v10, %v385_v54  ;;  %v781_v19 = vmul.f32 %v869_v9, %v1283_v5  ;;  %v878_v9 = vsel %vm742_vm10, 1.0, %v1057_v8  ;;  %v725_v10 = vadd.s32 104, %v1269_v59 }
 0x314   :  { %v784_v30 = vmul.f32 %v872_v22, %v1298_v20  ;;  %vm745_vm13 = vcmp.eq.s32.totalorder %v724_v3, %v1275_v62 }
 0x315   :  { %v782_v21 = vmul.f32 %v870_v11, %v1291_v13  ;;  %v445_v11 = vpop.permute.xlu1 %444  ;;  %vm746_vm14 = vcmp.eq.s32.totalorder %v725_v10, %v1275_v62 }
 0x317   :  { %v797_v25 = vadd.f32 %v782_v21, %v781_v19  ;;  %v947_v26 = vpop.f32.mrb[8].mxu1  ;;  %v726_v21 = vadd.s32 112, %v1269_v59 }
 0x318   :  { %v1305_v27 = vadd.f32 %v947_v26, %v410_v0  ;;  %v571_v28 = vpop.f32.mrb[9].mxu1  ;;  %v727_v26 = vadd.s32 120, %v1269_v59 }
 0x319   :  { %v798_v31 = vadd.f32 %v797_v25, %v783_v24  ;;  %v1311_v32 = vadd.f32 %v571_v28, %v400_v58  ;;  %v948_v33 = vpop.f32.mrb[10].mxu1  ;;  %v450_v28 = vpop.permute.xlu0 %449  ;;  %vm747_vm15 = vcmp.eq.s32.totalorder %v726_v21, %v1275_v62 }
 0x31a   :  { %v620_v35 = vmax.f32 %v1288_v12, %v1305_v27  ;;  %v1316_v36 = vadd.f32 %v948_v33, %v415_v4  ;;  %v574_v37 = vpop.f32.mrb[11].mxu1  ;;  %v787_v54 = vmul.f32 %v875_v45, %v1305_v27  ;;  %vm748_vm0 = vcmp.eq.s32.totalorder %v727_v26, %v1275_v62 }
 0x31b   :  { %v618_v41 = vmax.f32 %v1283_v5, %v1311_v32  ;;  %v785_v42 = vmul.f32 %v873_v29, %v1311_v32  ;;  %v799_v43 = vadd.f32 %v798_v31, %v784_v30  ;;  %v1323_v44 = vadd.f32 %v574_v37, %v405_v60  ;;  %v455_v37 = vpop.permute.xlu1 %454 }
 0x31c   :  { %v621_v46 = vmax.f32 %v1298_v20, %v1316_v36  ;;  %v877_v60 = vsel %vm741_vm9, 1.0, %v1057_v8  ;;  %v788_v63 = vmul.f32 %v876_v53, %v1316_v36  ;;  %v882_v45 = vsel %vm746_vm14, 1.0, %v1057_v8 }
 0x31d   :  { %v800_v50 = vadd.f32 %v799_v43, %v785_v42  ;;  %v619_v51 = vmax.f32 %v1291_v13, %v1323_v44  ;;  %v786_v52 = vmul.f32 %v874_v38, %v1323_v44 }
 0x31f   :  { %v801_v55 = vadd.f32 %v800_v50, %v786_v52  ;;  %v951_v56 = vpop.f32.mrb[12].mxu1  ;;  %v883_v50 = vsel %vm747_vm15, 1.0, %v1057_v8 }
 0x320   :  { %v1341_v57 = vadd.f32 %v951_v56, %v430_v40  ;;  %v587_v58 = vpop.f32.mrb[13].mxu1 }
 0x321   :  { %v802_v0 = vadd.f32 %v801_v55, %v787_v54  ;;  %v1347_v1 = vadd.f32 %v587_v58, %v420_v18  ;;  %v952_v2 = vpop.f32.mrb[14].mxu1  ;;  %v879_v18 = vsel %vm743_vm11, 1.0, %v1057_v8  ;;  %v884_v55 = vsel %vm748_vm0, 1.0, %v1057_v8 }
 0x322   :  { %v624_v4 = vmax.f32 %v620_v35, %v1341_v57  ;;  %v1351_v6 = vadd.f32 %v952_v2, %v435_v49  ;;  %v590_v7 = vpop.f32.mrb[15].mxu1  ;;  %v791_v29 = vmul.f32 %v879_v18, %v1341_v57  ;;  %v881_v35 = vsel %vm745_vm13, 1.0, %v1057_v8 }
 0x323   :  { %v622_v14 = vmax.f32 %v618_v41, %v1347_v1  ;;  %v789_v15 = vmul.f32 %v877_v60, %v1347_v1  ;;  %v803_v16 = vadd.f32 %v802_v0, %v788_v63  ;;  %v1357_v17 = vadd.f32 %v590_v7, %v425_v23 }
 0x324   :  { %v625_v19 = vmax.f32 %v621_v46, %v1351_v6  ;;  %v880_v23 = vsel %vm744_vm12, 1.0, %v1057_v8 }
 0x325   :  { %v804_v22 = vadd.f32 %v803_v16, %v789_v15  ;;  %v623_v24 = vmax.f32 %v619_v51, %v1357_v17  ;;  %v790_v25 = vmul.f32 %v878_v9, %v1357_v17  ;;  %v792_v38 = vmul.f32 %v880_v23, %v1351_v6 }
 0x327   :  { %v805_v30 = vadd.f32 %v804_v22, %v790_v25  ;;  %v955_v31 = vpop.f32.mrb[16].mxu1 }
 0x328   :  { %v1373_v33 = vadd.f32 %v955_v31, %v450_v28  ;;  %v603_v34 = vpop.f32.mrb[17].mxu1 }
 0x329   :  { %v806_v39 = vadd.f32 %v805_v30, %v791_v29  ;;  %v1378_v40 = vadd.f32 %v603_v34, %v440_v61  ;;  %v956_v59 = vpop.f32.mrb[18].mxu1 }
 0x32a   :  { %v628_v41 = vmax.f32 %v624_v4, %v1373_v33  ;;  %v1381_v42 = vadd.f32 %v956_v59, %v455_v37  ;;  %v606_v43 = vpop.f32.mrb[19].mxu1  ;;  %v795_v56 = vmul.f32 %v883_v50, %v1373_v33 }
 0x32b   :  { %v626_v46 = vmax.f32 %v622_v14, %v1378_v40  ;;  %v793_v47 = vmul.f32 %v881_v35, %v1378_v40  ;;  %v807_v48 = vadd.f32 %v806_v39, %v792_v38  ;;  %v1387_v49 = vadd.f32 %v606_v43, %v445_v11 }
 0x32c   :  { %v629_v51 = vmax.f32 %v625_v19, %v1381_v42  ;;  %v796_v61 = vmul.f32 %v884_v55, %v1381_v42 }
 0x32d   :  { %v808_v52 = vadd.f32 %v807_v48, %v793_v47  ;;  %v627_v53 = vmax.f32 %v623_v24, %v1387_v49  ;;  %v794_v54 = vmul.f32 %v882_v45, %v1387_v49 }
 0x32e   :  { %v631_v62 = vmax.f32 %v628_v41, %v629_v51 }
 0x32f   :  { %v630_v58 = vmax.f32 %v626_v46, %v627_v53  ;;  %v809_v60 = vadd.f32 %v808_v52, %v794_v54 }
 0x331   :  { %v632_v63 = vmax.f32 %v630_v58, %v631_v62  ;;  %v810_v0 = vadd.f32 %v809_v60, %v795_v56 }
 0x333   :  { %v633_v2 = vrot.slane %v632_v63, 4  ;;  %v1396_v3 = vadd.f32 %v810_v0, %v796_v61 }
 0x335   :  { %v634_v4 = vmax.f32 %v632_v63, %v633_v2 }
 0x337   :  { %v635_v7 = vrot.slane %v634_v4, 2 }
 0x339   :  { %v636_v9 = vmax.f32 %v634_v4, %v635_v7 }
 0x33b   :  { %v637_v10 = vrot.slane %v636_v9, 1 }
 0x33d   :  { %v1398_v11 = vmax.f32 %v636_v9, %v637_v10 }
 0x33f   :  { %v639_v8 = vsub.f32 %v1283_v5, %v1398_v11  ;;  %v640_v14 = vsub.f32 %v1291_v13, %v1398_v11  ;;  %v641_v15 = vsub.f32 %v1288_v12, %v1398_v11  ;;  %v642_v16 = vsub.f32 %v1298_v20, %v1398_v11 }
 0x340   :  { %v643_v19 = vsub.f32 %v1311_v32, %v1398_v11  ;;  %v644_v24 = vsub.f32 %v1323_v44, %v1398_v11  ;;  %v645_v13 = vsub.f32 %v1305_v27, %v1398_v11  ;;  %v646_v20 = vsub.f32 %v1316_v36, %v1398_v11 }
 0x341   :  { %v655_v18 = vmul.f32 1.442695, %v639_v8  ;;  %v657_v21 = vmul.f32 1.442695, %v640_v14  ;;  %v659_v22 = vmul.f32 1.442695, %v641_v15  ;;  %v647_v32 = vsub.f32 %v1347_v1, %v1398_v11 }
 0x342   :  { %v661_v5 = vmul.f32 1.442695, %v642_v16  ;;  %v663_v12 = vmul.f32 1.442695, %v643_v19  ;;  %v665_v25 = vmul.f32 1.442695, %v644_v24  ;;  %v648_v44 = vsub.f32 %v1357_v17, %v1398_v11 }
 0x343   :  { %998 = vpow2.f32 %v655_v18  ;;  %v667_v23 = vmul.f32 1.442695, %v645_v13  ;;  %v669_v26 = vmul.f32 1.442695, %v646_v20  ;;  %v649_v27 = vsub.f32 %v1341_v57, %v1398_v11 }
 0x344   :  { %1000 = vpow2.f32 %v657_v21  ;;  %v671_v30 = vmul.f32 1.442695, %v647_v32  ;;  %v650_v34 = vsub.f32 %v1351_v6, %v1398_v11  ;;  %v673_v1 = vmul.f32 1.442695, %v648_v44  ;;  %v819_v44 = vld [vmem:[%s1452_s2] sm:$0x1] }
 0x345   :  { %1002 = vpow2.f32 %v659_v22  ;;  %v651_v17 = vsub.f32 %v1378_v40, %v1398_v11  ;;  %v675_v38 = vmul.f32 1.442695, %v649_v27  ;;  %v652_v57 = vsub.f32 %v1387_v49, %v1398_v11 }
 0x346   :  { %1004 = vpow2.f32 %v661_v5  ;;  %v677_v41 = vmul.f32 1.442695, %v650_v34  ;;  %v653_v6 = vsub.f32 %v1373_v33, %v1398_v11  ;;  %v654_v50 = vsub.f32 %v1381_v42, %v1398_v11 }
 0x347   :  { %1006 = vpow2.f32 %v663_v12  ;;  %v679_v46 = vmul.f32 1.442695, %v651_v17  ;;  %v681_v40 = vmul.f32 1.442695, %v652_v57  ;;  %v812_v18 = vrot.slane %v1396_v3, 4 }
 0x348   :  { %1008 = vpow2.f32 %v665_v25  ;;  %v683_v49 = vmul.f32 1.442695, %v653_v6  ;;  %v685_v62 = vmul.f32 1.442695, %v654_v50 }
 0x349   :  { %1010 = vpow2.f32 %v667_v23  ;;  %v813_v22 = vadd.f32 %v812_v18, %v1396_v3 }
 0x34a   :  { %1012 = vpow2.f32 %v669_v26 }
 0x34b   :  { %1014 = vpow2.f32 %v671_v30  ;;  %v814_v5 = vrot.slane %v813_v22, 2 }
 0x34c   :  { %1016 = vpow2.f32 %v673_v1 }
 0x34d   :  { %v999_v28 = vpop.eup %998  ;;  %1018 = vpow2.f32 %v675_v38  ;;  %v815_v13 = vadd.f32 %v814_v5, %v813_v22 }
 0x34e   :  { %v1001_v29 = vpop.eup %1000  ;;  %1020 = vpow2.f32 %v677_v41 }
 0x34f   :  { %v687_v36 = vadd.f32 %v1001_v29, %v999_v28  ;;  %v1003_v31 = vpop.eup %1002  ;;  %1022 = vpow2.f32 %v679_v46  ;;  %v816_v12 = vrot.slane %v815_v13, 1 }
 0x350   :  { %v1005_v37 = vpop.eup %1004  ;;  %1024 = vpow2.f32 %v681_v40 }
 0x351   :  { %v688_v35 = vadd.f32 %v1003_v31, %v687_v36  ;;  %v1007_v59 = vpop.eup %1006  ;;  %1026 = vpow2.f32 %v683_v49  ;;  %v817_v23 = vadd.f32 %v816_v12, %v815_v13 }
 0x352   :  { %v1009_v45 = vpop.eup %1008  ;;  %1028 = vpow2.f32 %v685_v62 }
 0x353   :  { %v689_v39 = vadd.f32 %v1005_v37, %v688_v35  ;;  %v1011_v48 = vpop.eup %1010 }
 0x354   :  { %v1013_v52 = vpop.eup %1012 }
 0x355   :  { %v690_v43 = vadd.f32 %v1007_v59, %v689_v39  ;;  %v1015_v54 = vpop.eup %1014 }
 0x356   :  { %v1017_v56 = vpop.eup %1016 }
 0x357   :  { %v691_v47 = vadd.f32 %v1009_v45, %v690_v43  ;;  %v1019_v58 = vpop.eup %1018 }
 0x358   :  { %v1021_v61 = vpop.eup %1020 }
 0x359   :  { %v692_v51 = vadd.f32 %v1011_v48, %v691_v47  ;;  %v1023_v0 = vpop.eup %1022 }
 0x35a   :  { %v1025_v42 = vpop.eup %1024 }
 0x35b   :  { %v693_v53 = vadd.f32 %v1013_v52, %v692_v51  ;;  %v1027_v7 = vpop.eup %1026 }
 0x35c   :  { %v1029_v10 = vpop.eup %1028 }
 0x35d   :  { %v694_v55 = vadd.f32 %v1015_v54, %v693_v53 }
 0x35f   :  { %v695_v33 = vadd.f32 %v1017_v56, %v694_v55 }
 0x361   :  { %v696_v60 = vadd.f32 %v1019_v58, %v695_v33 }
 0x363   :  { %v697_v63 = vadd.f32 %v1021_v61, %v696_v60 }
 0x365   :  { %v698_v2 = vadd.f32 %v1023_v0, %v697_v63 }
 0x367   :  { %v699_v4 = vadd.f32 %v1025_v42, %v698_v2 }
 0x369   :  { %v700_v9 = vadd.f32 %v1027_v7, %v699_v4 }
 0x36b   :  { %v701_v8 = vadd.f32 %v1029_v10, %v700_v9 }
 0x36d   :  { %v702_v14 = vrot.slane %v701_v8, 4 }
 0x36f   :  { %v703_v15 = vadd.f32 %v702_v14, %v701_v8 }
 0x371   :  { %v704_v16 = vrot.slane %v703_v15, 2 }
 0x373   :  { %v705_v19 = vadd.f32 %v704_v16, %v703_v15 }
 0x375   :  { %v706_v21 = vrot.slane %v705_v19, 1 }
 0x377   :  { %v707_v24 = vadd.f32 %v706_v21, %v705_v19 }
 0x379   :  { %1030 = vlog2.f32 %v707_v24 }
 0x383   :  { %v1031_v20 = vpop.eup %1030 }
 0x384   :  { %v709_v25 = vmul.f32 0.6931472, %v1031_v20 }
 0x386   :  { %v710_v32 = vadd.f32 %v709_v25, %v1398_v11 }
 0x388   :  { %v818_v26 = vsub.f32 %v710_v32, %v817_v23 }
 0x38a   :  { %v820_v28 = vmul.f32 %v819_v44, %v818_v26 }
 0x38c   :  { %821 = vst [vmem:[#allocation2] sm:$0x1] %v820_v28 }
 0x38d   :  { %1043 = shalt.err (!%p1040_p4)
}
 0x38e   :  { %s1044_s10 = scalar_lea.hbm %s1459_s9, 16 }
 0x38f   :  { %p1045_p5 = scmp.ne.s32.totalorder %s1459_s9, %s1044_s10  ;;  %p1048_p6 = scmp.lt.u32.totalorder %s1044_s10, %s1459_s9 }
 0x391   :  { %p1050_p7 = pnand %p1048_p6, %p1045_p5 }
 0x393   :  { %1053 = shalt.err (!%p1050_p7)
}
 0x394   :  { %831 = dma.vmem_to_hbm [thread:$0]  %s829_s27, 16, %s1459_s9, [#allocation3]  }
 0x395   :  { %1054 = dma.done.wait [#allocation3], 16  }
 0x396   :  { %1055 = vsyncadd [#allocation3], 4294967280 }
 0x397   :  { %835 = vsyncpa [#allocation3], 1 }

</bundles_post_ra>
